<compile_context>
chip_gen: v6e
topology: v6e:2x2x1
jax: 0.10.0
libtpu: 0.0.40
codegen_flags: <defaults>
</compile_context>

<pallas_src>
import jax
import jax.numpy as jnp
import numpy as np
from jax.experimental import pallas as pl
from jax.experimental.pallas import tpu as pltpu

N_CLASSES = 2      # binary lane / background
EMBED_DIMS = 4     # instance embedding dims
HIDDEN = 32        # backbone feature width
HEAD_PAD = 8       # fused head rows (2 binary + 4 instance + 2 zero pad)
LANE = 128
MIN_TILE_P = 512   # pixel-lane tile (multiple of 128 and of the halo)


def _round_up(a, b):
    return ((a + b - 1) // b) * b


def init_params(key, c_in):
    k1, k2, k3, k4, k5, k6 = jax.random.split(key, 6)
    conv_w = jax.random.normal(k1, (HIDDEN, c_in, 3, 3), jnp.float32) / np.sqrt(9 * c_in)
    conv_b = 0.1 * jax.random.normal(k2, (HIDDEN,), jnp.float32)
    wb = jax.random.normal(k3, (N_CLASSES, HIDDEN), jnp.float32) / np.sqrt(HIDDEN)
    bb = 0.1 * jax.random.normal(k4, (N_CLASSES,), jnp.float32)
    wi = jax.random.normal(k5, (EMBED_DIMS, HIDDEN), jnp.float32) / np.sqrt(HIDDEN)
    bi = 0.1 * jax.random.normal(k6, (EMBED_DIMS,), jnp.float32)
    return (conv_w, conv_b, wb, bb, wi, bi)


def _make_kernel(c_in, wp, tile_p):
    """Kernel over one (image n, pixel tile t) grid point.

    xc_ref : (c_in, tile_p)        bf16  current tile of the flattened padded image
    xh_ref : (c_in, halo)          bf16  halo (start of the next tile)
    w1_ref : (HIDDEN, 9*c_in)      bf16  3x3 conv weight, column order (ky, kx, c)
    b1_ref : (HIDDEN, 1)           f32
    wh_ref : (HEAD_PAD, HIDDEN)    bf16  fused binary+instance 1x1 head
    bh_ref : (HEAD_PAD, 1)         f32
    out_ref: (HEAD_PAD, tile_p)    f32   rows 0:2 binary logits, 2:6 instance logits
    pred_ref: (1, tile_p)          i32   binary argmax
    """
    def kernel(xc_ref, xh_ref, w1_ref, b1_ref, wh_ref, bh_ref, out_ref, pred_ref):
        # current tile + halo -> (c_in, tile_p + halo), lane-dense bf16
        x = jnp.concatenate([xc_ref[...], xh_ref[...]], axis=-1)
        w1 = w1_ref[...]

        # in-kernel im2col: 3x3 "same" conv == sum of 9 statically shifted matmuls.
        # Shift (ky, kx) == flat lane offset ky*wp + kx in the padded-image flattening.
        acc = jnp.zeros((HIDDEN, tile_p), jnp.float32)
        for k in range(9):
            off = (k // 3) * wp + (k % 3)                     # static
            xs = x[:, off:off + tile_p]                       # (c_in, tile_p) bf16
            wk = w1[:, k * c_in:(k + 1) * c_in]               # (HIDDEN, c_in) bf16
            acc = acc + jnp.dot(wk, xs, preferred_element_type=jnp.float32)

        feat = jnp.maximum(acc + b1_ref[...], 0.0)            # (HIDDEN, tile_p) f32

        # fused segmentation heads: one MXU push for binary + instance logits.
        logits = jnp.dot(wh_ref[...], feat.astype(jnp.bfloat16),
                         preferred_element_type=jnp.float32) + bh_ref[...]
        out_ref[...] = logits

        # LaneNetBackEnd: argmax(softmax(binary_logits)) == argmax(binary_logits);
        # 2 classes -> single lane-wise compare (first-max tie-break -> class 0 on ties).
        pred_ref[...] = (logits[1:2, :] > logits[0:1, :]).astype(jnp.int32)

    return kernel


def combined_model_forward(x_nchw, params):
    conv_w, conv_b, wb, bb, wi, bi = params
    N, Cin, H, W = x_nchw.shape
    Hp, Wp = H + 2, W + 2

    halo = _round_up(2 * Wp + 2, LANE)                 # covers the max 3x3 shift
    tile_p = _round_up(max(MIN_TILE_P, halo), halo)    # multiple of 128 and of halo
    P_img = H * Wp                                     # per-image flat output length
    T = pl.cdiv(P_img, tile_p)
    L_out = T * tile_p
    L_in = L_out + halo
    R = tile_p // halo

    # --- input prep: NCHW -> zero-pad spatial -> channel-major flat pixels, bf16 ---
    xp = jnp.pad(x_nchw.astype(jnp.float32), ((0, 0), (0, 0), (1, 1), (1, 1)))
    xf = xp.reshape(N, Cin, Hp * Wp)
    x_in = jnp.pad(xf, ((0, 0), (0, 0), (0, L_in - Hp * Wp))).astype(jnp.bfloat16)

    # --- weight packing ---
    w1 = jnp.transpose(conv_w, (0, 2, 3, 1)).reshape(HIDDEN, 9 * Cin).astype(jnp.bfloat16)
    b1 = conv_b.reshape(HIDDEN, 1).astype(jnp.float32)
    wh = jnp.concatenate([wb, wi], axis=0)
    wh = jnp.pad(wh, ((0, HEAD_PAD - wh.shape[0]), (0, 0))).astype(jnp.bfloat16)
    bh = jnp.concatenate([bb, bi], axis=0).reshape(-1, 1)
    bh = jnp.pad(bh, ((0, HEAD_PAD - bh.shape[0]), (0, 0))).astype(jnp.float32)

    kernel = _make_kernel(Cin, Wp, tile_p)
    fixed = lambda n, t: (0, 0)

    logits_all, pred_all = pl.pallas_call(
        kernel,
        out_shape=(
            jax.ShapeDtypeStruct((N, HEAD_PAD, L_out), jnp.float32),
            jax.ShapeDtypeStruct((N, 1, L_out), jnp.int32),
        ),
        grid=(N, T),
        in_specs=[
            # current pixel tile and its halo (same array passed twice).
            pl.BlockSpec((None, Cin, tile_p), lambda n, t: (n, 0, t)),
            pl.BlockSpec((None, Cin, halo), lambda n, t: (n, 0, (t + 1) * R)),
            pl.BlockSpec((HIDDEN, 9 * Cin), fixed),
            pl.BlockSpec((HIDDEN, 1), fixed),
            pl.BlockSpec((HEAD_PAD, HIDDEN), fixed),
            pl.BlockSpec((HEAD_PAD, 1), fixed),
        ],
        out_specs=(
            pl.BlockSpec((None, HEAD_PAD, tile_p), lambda n, t: (n, 0, t)),
            pl.BlockSpec((None, 1, tile_p), lambda n, t: (n, 0, t)),
        ),
        compiler_params=pltpu.CompilerParams(
            dimension_semantics=("parallel", "parallel")),
    )(x_in, x_in, w1, b1, wh, bh)

    # --- epilogue: lane-dense (C, pixels) layout reshapes straight to NCHW ---
    logits_img = logits_all[:, :, :P_img].reshape(N, HEAD_PAD, H, Wp)[:, :, :, :W]
    binary_seg_logits = logits_img[:, :N_CLASSES]
    instance_seg_logits = logits_img[:, N_CLASSES:N_CLASSES + EMBED_DIMS]
    binary_seg_prediction = pred_all[:, 0, :P_img].reshape(N, H, Wp)[:, :, :W]
    instance_seg_prediction = instance_seg_logits  # LaneNet backend passes embedding through
    return (binary_seg_logits, instance_seg_logits,
            binary_seg_prediction, instance_seg_prediction)


def reference_forward(x_nchw, params):
    """Pure-JAX reference (bf16 matmul operands mimicked for tight tolerances)."""
    conv_w, conv_b, wb, bb, wi, bi = params
    bf = lambda a: a.astype(jnp.bfloat16).astype(jnp.float32)
    feat = jax.lax.conv_general_dilated(
        bf(x_nchw.astype(jnp.float32)), bf(conv_w), window_strides=(1, 1),
        padding="SAME", dimension_numbers=("NCHW", "OIHW", "NCHW"))
    feat = jnp.maximum(feat + conv_b.reshape(1, -1, 1, 1), 0.0)
    featb = bf(feat)
    bl = jnp.einsum("ch,nhij->ncij", bf(wb), featb) + bb.reshape(1, -1, 1, 1)
    il = jnp.einsum("ch,nhij->ncij", bf(wi), featb) + bi.reshape(1, -1, 1, 1)
    bp = (bl[:, 1] > bl[:, 0]).astype(jnp.int32)
    return bl, il, bp, il


if __name__ == "__main__":
    key = jax.random.PRNGKey(0)
    kx, kp = jax.random.split(key)

    N, Cin, H, W = 2, 3, 16, 16
    x = jax.random.normal(kx, (N, Cin, H, W), jnp.float32)
    params = init_params(kp, Cin)

    fwd = jax.jit(combined_model_forward)
    outs = jax.block_until_ready(fwd(x, params))
    bl, il, bp, ip = outs

    assert bl.shape == (N, N_CLASSES, H, W) and bl.dtype == jnp.float32
    assert il.shape == (N, EMBED_DIMS, H, W) and il.dtype == jnp.float32
    assert bp.shape == (N, H, W) and bp.dtype == jnp.int32
    assert ip.shape == (N, EMBED_DIMS, H, W)

    # correctness vs. pure-JAX reference
    rbl, ril, _, _ = reference_forward(x, params)
    np.testing.assert_allclose(np.asarray(bl), np.asarray(rbl), rtol=2e-2, atol=2e-2)
    np.testing.assert_allclose(np.asarray(il), np.asarray(ril), rtol=2e-2, atol=2e-2)
    # prediction must be the exact argmax of the kernel's own binary logits
    pred_np = (np.asarray(bl)[:, 1] > np.asarray(bl)[:, 0]).astype(np.int32)
    assert np.array_equal(np.asarray(bp), pred_np)

    print("KERNEL_OK")
</pallas_src>

<mosaic_0001>
module attributes {stable_mosaic.version = 11 : i64} {
  func.func @kernel(%arg0: i32, %arg1: i32, %arg2: memref<1x3x512xbf16, #tpu.memory_space<vmem>>, %arg3: memref<1x3x128xbf16, #tpu.memory_space<vmem>>, %arg4: memref<32x27xbf16, #tpu.memory_space<vmem>>, %arg5: memref<32x1xf32, #tpu.memory_space<vmem>>, %arg6: memref<8x32xbf16, #tpu.memory_space<vmem>>, %arg7: memref<8x1xf32, #tpu.memory_space<vmem>>, %arg8: memref<1x8x512xf32, #tpu.memory_space<vmem>>, %arg9: memref<1x1x512xi32, #tpu.memory_space<vmem>>) attributes {dimension_semantics = [#tpu.dimension_semantics<parallel>, #tpu.dimension_semantics<parallel>], iteration_bounds = array<i64: 2, 1>, scalar_prefetch = 0 : i64, scratch_operands = 0 : i64, tpu.core_type = #tpu.core_type<tc>, window_params = [{transform_indices = @transform_0, window_bounds = array<i64: 1, 3, 512>}, {transform_indices = @transform_1, window_bounds = array<i64: 1, 3, 128>}, {pipeline_mode = #tpu.pipeline_mode<synchronous>, transform_indices = @transform_2, window_bounds = array<i64: 32, 27>}, {pipeline_mode = #tpu.pipeline_mode<synchronous>, transform_indices = @transform_3, window_bounds = array<i64: 32, 1>}, {pipeline_mode = #tpu.pipeline_mode<synchronous>, transform_indices = @transform_4, window_bounds = array<i64: 8, 32>}, {pipeline_mode = #tpu.pipeline_mode<synchronous>, transform_indices = @transform_5, window_bounds = array<i64: 8, 1>}, {transform_indices = @transform_6, window_bounds = array<i64: 1, 8, 512>}, {transform_indices = @transform_7, window_bounds = array<i64: 1, 1, 512>}]} {
    %c0 = arith.constant 0 : index
    %c0_0 = arith.constant 0 : index
    %c0_1 = arith.constant 0 : index
    %0 = vector.load %arg2[%c0, %c0_0, %c0_1] : memref<1x3x512xbf16, #tpu.memory_space<vmem>>, vector<1x3x512xbf16>
    %1 = vector.shape_cast %0 : vector<1x3x512xbf16> to vector<3x512xbf16>
    %c0_2 = arith.constant 0 : index
    %c0_3 = arith.constant 0 : index
    %c0_4 = arith.constant 0 : index
    %2 = vector.load %arg3[%c0_2, %c0_3, %c0_4] : memref<1x3x128xbf16, #tpu.memory_space<vmem>>, vector<1x3x128xbf16>
    %3 = vector.shape_cast %2 : vector<1x3x128xbf16> to vector<3x128xbf16>
    %4 = tpu.concatenate %1, %3 in 1 : vector<3x512xbf16>, vector<3x128xbf16> -> vector<3x640xbf16>
    %c0_5 = arith.constant 0 : index
    %c0_6 = arith.constant 0 : index
    %5 = vector.load %arg4[%c0_5, %c0_6] : memref<32x27xbf16, #tpu.memory_space<vmem>>, vector<32x27xbf16>
    %cst = arith.constant 0.000000e+00 : f32
    %6 = vector.broadcast %cst : f32 to vector<32x512xf32>
    %7 = vector.extract_strided_slice %4 {offsets = [0, 0], sizes = [3, 512], strides = [1, 1]} : vector<3x640xbf16> to vector<3x512xbf16>
    %8 = vector.extract_strided_slice %5 {offsets = [0, 0], sizes = [32, 3], strides = [1, 1]} : vector<32x27xbf16> to vector<32x3xbf16>
    %cst_7 = arith.constant dense<0.000000e+00> : vector<32x512xf32>
    %9 = tpu.matmul %8, %7, %cst_7 {dimension_numbers = #tpu.dot_dimension_numbers<[1], [0], [0], [1], [0, 0, 1, 1], [], []>} : vector<32x3xbf16>, vector<3x512xbf16>, vector<32x512xf32> -> vector<32x512xf32>
    %10 = arith.addf %6, %9 : vector<32x512xf32>
    %11 = vector.extract_strided_slice %4 {offsets = [0, 1], sizes = [3, 512], strides = [1, 1]} : vector<3x640xbf16> to vector<3x512xbf16>
    %12 = vector.extract_strided_slice %5 {offsets = [0, 3], sizes = [32, 3], strides = [1, 1]} : vector<32x27xbf16> to vector<32x3xbf16>
    %cst_8 = arith.constant dense<0.000000e+00> : vector<32x512xf32>
    %13 = tpu.matmul %12, %11, %cst_8 {dimension_numbers = #tpu.dot_dimension_numbers<[1], [0], [0], [1], [0, 0, 1, 1], [], []>} : vector<32x3xbf16>, vector<3x512xbf16>, vector<32x512xf32> -> vector<32x512xf32>
    %14 = arith.addf %10, %13 : vector<32x512xf32>
    %15 = vector.extract_strided_slice %4 {offsets = [0, 2], sizes = [3, 512], strides = [1, 1]} : vector<3x640xbf16> to vector<3x512xbf16>
    %16 = vector.extract_strided_slice %5 {offsets = [0, 6], sizes = [32, 3], strides = [1, 1]} : vector<32x27xbf16> to vector<32x3xbf16>
    %cst_9 = arith.constant dense<0.000000e+00> : vector<32x512xf32>
    %17 = tpu.matmul %16, %15, %cst_9 {dimension_numbers = #tpu.dot_dimension_numbers<[1], [0], [0], [1], [0, 0, 1, 1], [], []>} : vector<32x3xbf16>, vector<3x512xbf16>, vector<32x512xf32> -> vector<32x512xf32>
    %18 = arith.addf %14, %17 : vector<32x512xf32>
    %19 = vector.extract_strided_slice %4 {offsets = [0, 18], sizes = [3, 512], strides = [1, 1]} : vector<3x640xbf16> to vector<3x512xbf16>
    %20 = vector.extract_strided_slice %5 {offsets = [0, 9], sizes = [32, 3], strides = [1, 1]} : vector<32x27xbf16> to vector<32x3xbf16>
    %cst_10 = arith.constant dense<0.000000e+00> : vector<32x512xf32>
    %21 = tpu.matmul %20, %19, %cst_10 {dimension_numbers = #tpu.dot_dimension_numbers<[1], [0], [0], [1], [0, 0, 1, 1], [], []>} : vector<32x3xbf16>, vector<3x512xbf16>, vector<32x512xf32> -> vector<32x512xf32>
    %22 = arith.addf %18, %21 : vector<32x512xf32>
    %23 = vector.extract_strided_slice %4 {offsets = [0, 19], sizes = [3, 512], strides = [1, 1]} : vector<3x640xbf16> to vector<3x512xbf16>
    %24 = vector.extract_strided_slice %5 {offsets = [0, 12], sizes = [32, 3], strides = [1, 1]} : vector<32x27xbf16> to vector<32x3xbf16>
    %cst_11 = arith.constant dense<0.000000e+00> : vector<32x512xf32>
    %25 = tpu.matmul %24, %23, %cst_11 {dimension_numbers = #tpu.dot_dimension_numbers<[1], [0], [0], [1], [0, 0, 1, 1], [], []>} : vector<32x3xbf16>, vector<3x512xbf16>, vector<32x512xf32> -> vector<32x512xf32>
    %26 = arith.addf %22, %25 : vector<32x512xf32>
    %27 = vector.extract_strided_slice %4 {offsets = [0, 20], sizes = [3, 512], strides = [1, 1]} : vector<3x640xbf16> to vector<3x512xbf16>
    %28 = vector.extract_strided_slice %5 {offsets = [0, 15], sizes = [32, 3], strides = [1, 1]} : vector<32x27xbf16> to vector<32x3xbf16>
    %cst_12 = arith.constant dense<0.000000e+00> : vector<32x512xf32>
    %29 = tpu.matmul %28, %27, %cst_12 {dimension_numbers = #tpu.dot_dimension_numbers<[1], [0], [0], [1], [0, 0, 1, 1], [], []>} : vector<32x3xbf16>, vector<3x512xbf16>, vector<32x512xf32> -> vector<32x512xf32>
    %30 = arith.addf %26, %29 : vector<32x512xf32>
    %31 = vector.extract_strided_slice %4 {offsets = [0, 36], sizes = [3, 512], strides = [1, 1]} : vector<3x640xbf16> to vector<3x512xbf16>
    %32 = vector.extract_strided_slice %5 {offsets = [0, 18], sizes = [32, 3], strides = [1, 1]} : vector<32x27xbf16> to vector<32x3xbf16>
    %cst_13 = arith.constant dense<0.000000e+00> : vector<32x512xf32>
    %33 = tpu.matmul %32, %31, %cst_13 {dimension_numbers = #tpu.dot_dimension_numbers<[1], [0], [0], [1], [0, 0, 1, 1], [], []>} : vector<32x3xbf16>, vector<3x512xbf16>, vector<32x512xf32> -> vector<32x512xf32>
    %34 = arith.addf %30, %33 : vector<32x512xf32>
    %35 = vector.extract_strided_slice %4 {offsets = [0, 37], sizes = [3, 512], strides = [1, 1]} : vector<3x640xbf16> to vector<3x512xbf16>
    %36 = vector.extract_strided_slice %5 {offsets = [0, 21], sizes = [32, 3], strides = [1, 1]} : vector<32x27xbf16> to vector<32x3xbf16>
    %cst_14 = arith.constant dense<0.000000e+00> : vector<32x512xf32>
    %37 = tpu.matmul %36, %35, %cst_14 {dimension_numbers = #tpu.dot_dimension_numbers<[1], [0], [0], [1], [0, 0, 1, 1], [], []>} : vector<32x3xbf16>, vector<3x512xbf16>, vector<32x512xf32> -> vector<32x512xf32>
    %38 = arith.addf %34, %37 : vector<32x512xf32>
    %39 = vector.extract_strided_slice %4 {offsets = [0, 38], sizes = [3, 512], strides = [1, 1]} : vector<3x640xbf16> to vector<3x512xbf16>
    %40 = vector.extract_strided_slice %5 {offsets = [0, 24], sizes = [32, 3], strides = [1, 1]} : vector<32x27xbf16> to vector<32x3xbf16>
    %cst_15 = arith.constant dense<0.000000e+00> : vector<32x512xf32>
    %41 = tpu.matmul %40, %39, %cst_15 {dimension_numbers = #tpu.dot_dimension_numbers<[1], [0], [0], [1], [0, 0, 1, 1], [], []>} : vector<32x3xbf16>, vector<3x512xbf16>, vector<32x512xf32> -> vector<32x512xf32>
    %42 = arith.addf %38, %41 : vector<32x512xf32>
    %c0_16 = arith.constant 0 : index
    %c0_17 = arith.constant 0 : index
    %43 = vector.load %arg5[%c0_16, %c0_17] : memref<32x1xf32, #tpu.memory_space<vmem>>, vector<32x1xf32>
    %44 = vector.broadcast %43 : vector<32x1xf32> to vector<32x512xf32>
    %45 = arith.addf %42, %44 : vector<32x512xf32>
    %cst_18 = arith.constant 0.000000e+00 : f32
    %46 = vector.broadcast %cst_18 : f32 to vector<32x512xf32>
    %47 = arith.maximumf %45, %46 : vector<32x512xf32>
    %c0_19 = arith.constant 0 : index
    %c0_20 = arith.constant 0 : index
    %48 = vector.load %arg6[%c0_19, %c0_20] : memref<8x32xbf16, #tpu.memory_space<vmem>>, vector<8x32xbf16>
    %49 = arith.truncf %47 : vector<32x512xf32> to vector<32x512xbf16>
    %cst_21 = arith.constant dense<0.000000e+00> : vector<8x512xf32>
    %50 = tpu.matmul %48, %49, %cst_21 {dimension_numbers = #tpu.dot_dimension_numbers<[1], [0], [0], [1], [0, 0, 1, 1], [], []>} : vector<8x32xbf16>, vector<32x512xbf16>, vector<8x512xf32> -> vector<8x512xf32>
    %c0_22 = arith.constant 0 : index
    %c0_23 = arith.constant 0 : index
    %51 = vector.load %arg7[%c0_22, %c0_23] : memref<8x1xf32, #tpu.memory_space<vmem>>, vector<8x1xf32>
    %52 = vector.broadcast %51 : vector<8x1xf32> to vector<8x512xf32>
    %53 = arith.addf %50, %52 : vector<8x512xf32>
    %c0_24 = arith.constant 0 : index
    %c0_25 = arith.constant 0 : index
    %c0_26 = arith.constant 0 : index
    %54 = vector.load %arg8[%c0_24, %c0_25, %c0_26] : memref<1x8x512xf32, #tpu.memory_space<vmem>>, vector<1x8x512xf32>
    %55 = vector.shape_cast %54 : vector<1x8x512xf32> to vector<8x512xf32>
    %56 = vector.shape_cast %53 : vector<8x512xf32> to vector<1x8x512xf32>
    tpu.vector_store %arg8[%c0_24, %c0_25, %c0_26], %56 {strides = array<i32>} : memref<1x8x512xf32, #tpu.memory_space<vmem>>, vector<1x8x512xf32>,
    %57 = vector.extract_strided_slice %53 {offsets = [1, 0], sizes = [1, 512], strides = [1, 1]} : vector<8x512xf32> to vector<1x512xf32>
    %58 = vector.extract_strided_slice %53 {offsets = [0, 0], sizes = [1, 512], strides = [1, 1]} : vector<8x512xf32> to vector<1x512xf32>
    %59 = arith.cmpf ogt, %57, %58 : vector<1x512xf32>
    %60 = arith.extui %59 : vector<1x512xi1> to vector<1x512xi32>
    %c0_27 = arith.constant 0 : index
    %c0_28 = arith.constant 0 : index
    %c0_29 = arith.constant 0 : index
    %61 = vector.load %arg9[%c0_27, %c0_28, %c0_29] : memref<1x1x512xi32, #tpu.memory_space<vmem>>, vector<1x1x512xi32>
    %62 = vector.shape_cast %61 : vector<1x1x512xi32> to vector<1x512xi32>
    %63 = vector.shape_cast %60 : vector<1x512xi32> to vector<1x1x512xi32>
    tpu.vector_store %arg9[%c0_27, %c0_28, %c0_29], %63 {strides = array<i32>} : memref<1x1x512xi32, #tpu.memory_space<vmem>>, vector<1x1x512xi32>,
    return
  }
  func.func @transform_0(%arg0: i32, %arg1: i32) -> (i32, i32, i32) {
    %c0_i32 = arith.constant 0 : i32
    %c0_i32_0 = arith.constant 0 : i32
    return %arg0, %c0_i32, %arg1 : i32, i32, i32
  }
  func.func @transform_1(%arg0: i32, %arg1: i32) -> (i32, i32, i32) {
    %c1_i32 = arith.constant 1 : i32
    %0 = arith.addi %arg1, %c1_i32 : i32
    %c4_i32 = arith.constant 4 : i32
    %1 = arith.muli %0, %c4_i32 : i32
    %c0_i32 = arith.constant 0 : i32
    %c0_i32_0 = arith.constant 0 : i32
    return %arg0, %c0_i32, %1 : i32, i32, i32
  }
  func.func @transform_2(%arg0: i32, %arg1: i32) -> (i32, i32) {
    %c0_i32 = arith.constant 0 : i32
    %c0_i32_0 = arith.constant 0 : i32
    %c0_i32_1 = arith.constant 0 : i32
    return %c0_i32, %c0_i32_0 : i32, i32
  }
  func.func @transform_3(%arg0: i32, %arg1: i32) -> (i32, i32) {
    %c0_i32 = arith.constant 0 : i32
    %c0_i32_0 = arith.constant 0 : i32
    %c0_i32_1 = arith.constant 0 : i32
    return %c0_i32, %c0_i32_0 : i32, i32
  }
  func.func @transform_4(%arg0: i32, %arg1: i32) -> (i32, i32) {
    %c0_i32 = arith.constant 0 : i32
    %c0_i32_0 = arith.constant 0 : i32
    %c0_i32_1 = arith.constant 0 : i32
    return %c0_i32, %c0_i32_0 : i32, i32
  }
  func.func @transform_5(%arg0: i32, %arg1: i32) -> (i32, i32) {
    %c0_i32 = arith.constant 0 : i32
    %c0_i32_0 = arith.constant 0 : i32
    %c0_i32_1 = arith.constant 0 : i32
    return %c0_i32, %c0_i32_0 : i32, i32
  }
  func.func @transform_6(%arg0: i32, %arg1: i32) -> (i32, i32, i32) {
    %c0_i32 = arith.constant 0 : i32
    %c0_i32_0 = arith.constant 0 : i32
    return %arg0, %c0_i32, %arg1 : i32, i32, i32
  }
  func.func @transform_7(%arg0: i32, %arg1: i32) -> (i32, i32, i32) {
    %c0_i32 = arith.constant 0 : i32
    %c0_i32_0 = arith.constant 0 : i32
    return %arg0, %c0_i32, %arg1 : i32, i32, i32
  }
}

</mosaic_0001>

<bundles_post_ra>
// kernel: squeeze.1
= control target key start
LH: loop header
LB: loop body
LE: loop exit
PB: predicated region body
PF: predicated region fallthrough
CT: control target
= control target key end

     0   :  { %s235_s0 = inlined_call_operand.vmem [shape: s32[2,288], index: 0, kind: input, shape index: {}]   ;;  %s236_s1 = inlined_call_operand.hbm [shape: s32[2,16,18], index: 1, kind: output, shape index: {}]  }
   0x1   :  { %v15_v0 = vld [vmem:[%s235_s0] sm:$0x3]  ;;  %v143_v1 = vld [vmem:[%s235_s0 + $0x4] sm:$0x3]  ;;  %v144_v2 = vld [vmem:[%s235_s0 + $0x2] sm:$0x3] }
   0x2   :  { %16 = vst [vmem:[#allocation2 + $0x8] sm:$0x3] %v15_v0  ;;  %10 = vst [vmem:[#allocation2] sm:$0x3] %v143_v1 }
   0x3   :  { %14 = vst [vmem:[#allocation2 + $0x10] sm:$0x3] %v144_v2 }
   0x4   :  { %2 = vsyncpa [#allocation1], 0  ;;  %vm109_vm0 = vcmask 1014784   ;;  %s183_s0 = smov 110   ;;  %s184_s12 = smov 114   ;;  %vm122_vm1 = vcmask 1031168  }
   0x5   :  { %s185_s13 = smov 4   ;;  %s186_s14 = smov 112   ;;  %vm18_vm2 = vcmask 146432   ;;  %vm113_vm3 = vcmask 31744   ;;  %vm116_vm4 = vcmask 146464   ;;  %vm126_vm5 = vcmask 15360  }
   0x6   :  { %s187_s15 = smov 2   ;;  %s188_s16 = smov 94   ;;  %vm129_vm6 = vcmask 146448  }
   0x7   :  { %s189_s17 = smov 92   ;;  %s190_s18 = smov 76  }
   0x8   :  { %s191_s19 = smov 74   ;;  %s192_s20 = smov 58  }
   0x9   :  { %v34_v3 = vld [vmem:[#allocation2 + $0x8] sm:$0x3]   ;;  %v108_v4 = vld [vmem:[#allocation2] sm:$0x3]   ;;  %s193_s21 = smov 56   ;;  %s194_s22 = smov 40  }
   0xa   :  { %v21_v5 = vld [vmem:[#allocation2] sm:$0x3]   ;;  %35 = vrot.lane.b32.xlu0 %v34_v3, %s183_s0  ;;  %v106_v6 = vld [vmem:[#allocation2 + $0x10] sm:$0x3]   ;;  %v119_v9 = vld [vmem:[#allocation2 + $0x8] sm:$0x3]  }
   0xb   :  { %22 = vrot.lane.b32.xlu1 %v21_v5, %s184_s12  ;;  %v110_v7 = vsel %vm109_vm0, %v108_v4, %v106_v6  ;;  %v28_v8 = vld [vmem:[#allocation2 + $0x10] sm:$0x3]   ;;  %v47_v13 = vld [vmem:[#allocation2 + $0x8] sm:$0x3]   ;;  %s195_s23 = smov 38   ;;  %s196_s24 = smov 22  }
   0xc   :  { %v121_v10 = vld [vmem:[#allocation2 + $0x10] sm:$0x3]   ;;  %v60_v15 = vld [vmem:[#allocation2 + $0x8] sm:$0x3]   ;;  %s197_s25 = smov 20   ;;  %s198_s26 = smov [#allocation0]  }
   0xd   :  { %v123_v11 = vsel %vm122_vm1, %v121_v10, %v119_v9  ;;  %v41_v12 = vld [vmem:[#allocation2 + $0x10] sm:$0x3]   ;;  %v17_v17 = vld [vmem:[#allocation2 + $0x8] sm:$0x3]   ;;  %s136_s27 = sshll.u32 %s198_s26, 4  ;;  %s137_s27 = int_to_ptr.vmem [resolvable:$true] %s136_s27 }
   0xe   :  { %111 = vrot.lane.b32.xlu0 %v110_v7, %s185_s13  ;;  %v54_v14 = vld [vmem:[#allocation2 + $0x10] sm:$0x3]   ;;  %19 = vst.msk [vmem:[#allocation0] ss:$16 sm:$0x3] %vm18_vm2, %v17_v17   ;;  %s161_s28 = scalar_lea.vmem %s137_s27, 512  ;;  %p166_p1 = scmp.lt.s32.totalorder %s137_s27, %s137_s27 }
   0xf   :  { %29 = vrot.lane.b32.xlu1 %v28_v8, %s186_s14  ;;  %v67_v16 = vld [vmem:[#allocation2 + $0x10] sm:$0x3]   ;;  %v73_v18 = vld [vmem:[#allocation2 + $0x8] sm:$0x3]   ;;  %p162_p0 = scmp.ne.s32.totalorder %s137_s27, %s161_s28  ;;  %p167_p2 = scmp.lt.s32.totalorder %s161_s28, %s161_s28 }
  0x10   :  { %v80_v19 = vld [vmem:[#allocation2 + $0x10] sm:$0x3]   ;;  %v86_v20 = vld [vmem:[#allocation2 + $0x8] sm:$0x3]  }
  0x11   :  { %v93_v21 = vld [vmem:[#allocation2 + $0x10] sm:$0x3]   ;;  %v99_v22 = vld [vmem:[#allocation2 + $0x8] sm:$0x3]   ;;  %p168_p3 = por %p167_p2, %p166_p1 }
  0x12   :  { %124 = vrot.lane.b32.xlu0 %v123_v11, %s187_s15 }
  0x13   :  { %42 = vrot.lane.b32.xlu1 %v41_v12, %s188_s16  ;;  %p169_p4 = pnand %p168_p3, %p162_p0 }
  0x16   :  { %48 = vrot.lane.b32.xlu0 %v47_v13, %s189_s17 }
  0x17   :  { %55 = vrot.lane.b32.xlu1 %v54_v14, %s190_s18 }
  0x1a   :  { %61 = vrot.lane.b32.xlu0 %v60_v15, %s191_s19 }
  0x1b   :  { %68 = vrot.lane.b32.xlu1 %v67_v16, %s192_s20 }
  0x1e   :  { %74 = vrot.lane.b32.xlu0 %v73_v18, %s193_s21 }
  0x1f   :  { %81 = vrot.lane.b32.xlu1 %v80_v19, %s194_s22 }
  0x22   :  { %87 = vrot.lane.b32.xlu0 %v86_v20, %s195_s23 }
  0x23   :  { %94 = vrot.lane.b32.xlu1 %v93_v21, %s196_s24 }
  0x26   :  { %100 = vrot.lane.b32.xlu0 %v99_v22, %s197_s25 }
  0x7c   :  { %v36_v23 = vpop.permute.xlu0 %35  }
  0x7d   :  { %v23_v24 = vpop.permute.xlu1 %22   ;;  %39 = vst.msk [vmem:[#allocation0 + $0x1] ss:$16 sm:$0x3] %vm18_vm2, %v36_v23  }
  0x7e   :  { %26 = vst.msk [vmem:[#allocation0 + $0xf] ss:$16 sm:$0x3] %vm18_vm2, %v23_v24  }
  0x80   :  { %v112_v25 = vpop.permute.xlu0 %111  }
  0x81   :  { %v30_v26 = vpop.permute.xlu1 %29   ;;  %115 = vst.msk [vmem:[#allocation0 + $0xe] ss:$16 sm:$0x3] %vm113_vm3, %v112_v25  }
  0x82   :  { %33 = vst.msk [vmem:[#allocation0 + $0x8] ss:$16 sm:$0x3] %vm18_vm2, %v30_v26  }
  0x83   :  { %118 = vst.msk [vmem:[#allocation0 + $0xe] ss:$16 sm:$0x3] %vm116_vm4, %v112_v25  }
  0x84   :  { %v125_v27 = vpop.permute.xlu0 %124  }
  0x85   :  { %v43_v28 = vpop.permute.xlu1 %42   ;;  %128 = vst.msk [vmem:[#allocation0 + $0x7] ss:$16 sm:$0x3] %vm126_vm5, %v125_v27  }
  0x86   :  { %46 = vst.msk [vmem:[#allocation0 + $0x9] ss:$16 sm:$0x3] %vm18_vm2, %v43_v28  }
  0x87   :  { %131 = vst.msk [vmem:[#allocation0 + $0x7] ss:$16 sm:$0x3] %vm129_vm6, %v125_v27  }
  0x88   :  { %v49_v29 = vpop.permute.xlu0 %48  }
  0x89   :  { %v56_v30 = vpop.permute.xlu1 %55   ;;  %52 = vst.msk [vmem:[#allocation0 + $0x2] ss:$16 sm:$0x3] %vm18_vm2, %v49_v29  }
  0x8a   :  { %59 = vst.msk [vmem:[#allocation0 + $0xa] ss:$16 sm:$0x3] %vm18_vm2, %v56_v30  }
  0x8c   :  { %v62_v31 = vpop.permute.xlu0 %61  }
  0x8d   :  { %v69_v32 = vpop.permute.xlu1 %68   ;;  %65 = vst.msk [vmem:[#allocation0 + $0x3] ss:$16 sm:$0x3] %vm18_vm2, %v62_v31  }
  0x8e   :  { %72 = vst.msk [vmem:[#allocation0 + $0xb] ss:$16 sm:$0x3] %vm18_vm2, %v69_v32  }
  0x90   :  { %v75_v33 = vpop.permute.xlu0 %74  }
  0x91   :  { %v82_v34 = vpop.permute.xlu1 %81   ;;  %78 = vst.msk [vmem:[#allocation0 + $0x4] ss:$16 sm:$0x3] %vm18_vm2, %v75_v33  }
  0x92   :  { %85 = vst.msk [vmem:[#allocation0 + $0xc] ss:$16 sm:$0x3] %vm18_vm2, %v82_v34  }
  0x94   :  { %v88_v35 = vpop.permute.xlu0 %87  }
  0x95   :  { %v95_v36 = vpop.permute.xlu1 %94   ;;  %91 = vst.msk [vmem:[#allocation0 + $0x5] ss:$16 sm:$0x3] %vm18_vm2, %v88_v35  }
  0x96   :  { %98 = vst.msk [vmem:[#allocation0 + $0xd] ss:$16 sm:$0x3] %vm18_vm2, %v95_v36  }
  0x98   :  { %v101_v37 = vpop.permute.xlu0 %100  }
  0x99   :  { %104 = vst.msk [vmem:[#allocation0 + $0x6] ss:$16 sm:$0x3] %vm18_vm2, %v101_v37  }
  0x9a   :  { %172 = shalt.err (!%p169_p4)
}
  0x9b   :  { %139 = dma.vmem_to_hbm [thread:$0]  %s137_s27, 512, %s236_s1, [#allocation1]  }
  0x9c   :  { %181 = dma.done.wait [#allocation1], 512  }
  0x9d   :  { %182 = vsyncadd [#allocation1], 4294966784 }
  0x9e   :  { %141 = vsyncpa [#allocation1], 1 }

// kernel: combined_model_forward.1
= control target key start
LH: loop header
LB: loop body
LE: loop exit
PB: predicated region body
PF: predicated region fallthrough
CT: control target
= control target key end

     0   :  { %s2374_s24 = smov 0   ;;  %s2376_s25 = smov 0   ;;  %s2788_s0 = inlined_call_operand.vmem [shape: bf16[2,3,640], index: 0, kind: input, shape index: {}, may-alias: {0,1}]   ;;  %s2789_s1 = inlined_call_operand.vmem [shape: bf16[2,3,640], index: 1, kind: input, shape index: {}, may-alias: {0,1}]   ;;  %s2790_s2 = inlined_call_operand.vmem [shape: bf16[32,27], index: 2, kind: input, shape index: {}]   ;;  %s2791_s3 = inlined_call_operand.vmem [shape: f32[32,1], index: 3, kind: input, shape index: {}]   ;;  %s2792_s4 = inlined_call_operand.vmem [shape: bf16[8,32], index: 4, kind: input, shape index: {}]   ;;  %s2793_s5 = inlined_call_operand.vmem [shape: f32[8,1], index: 5, kind: input, shape index: {}]   ;;  %s2794_s6 = inlined_call_operand.vmem [shape: f32[2,8,512], index: 6, kind: output, shape index: {0}]   ;;  %s2795_s7 = inlined_call_operand.vmem [shape: s32[2,1,512], index: 7, kind: output, shape index: {1}]  }
   0x1   :  { %s2378_s26 = smov 0  }
   0x2 LB: > { %s30_s27 = sadd.s32 1, %s2309_s25  ;;  %p2189_p0 = scmp.ge.s32.totalorder %s2313_s26, 1  ;;  %s2313_s26 = sphi %s2378_s26, %s18_s26   ;;  %s2309_s25 = sphi %s2376_s25, %s2827_s25   ;;  %s2305_s24 = sphi %s2374_s24, %s2826_s24  }
   0x3   : > { %p32_p1 = scmp.ge.s32.totalorder %s30_s27, 2  ;;  %p294_p2 = scmp.lt.s32.totalorder %s2313_s26, 3 }
   0x5   : > { %s2829_s27 = smov (%p32_p1, %s30_s27), 0  ;;  %p295_p3 = pnand %p2189_p0, %p294_p2 }
   0x7   : > { %298 = sbr.rel (%p295_p3) target bundleno = 713 (0x2c9), region = 44 }
   0xc   : > { %p361_p4 = scmp.lt.s32.totalorder %s2305_s24, 1  ;;  %v2796_v0 = vlaneseq  ;;  %v2315_v1 = vmov 1983009808   ;;  %v2797_v11 = vmov 0   ;;  %s2317_s10 = smov 127   ;;  %v2430_v14 = vld [vmem:[%s2790_s2] sm:$0xff]  }
   0xd   : > { %v411_v2 = vunpack.c.l.s4 %v2315_v1  ;;  %568 = vmatprep.mubr.bf16.mxu1 %v2797_v11  ;;  %515 = vmatprep.mubr.bf16.mxu0 %v2797_v11  ;;  %v2436_v15 = vld [vmem:[%s2790_s2 + $0x8] sm:$0xff]   ;;  %s2318_s18 = smov 125   ;;  %s2319_s19 = smov 126   ;;  %vm467_vm0 = vcmask 1040384   ;;  %vm468_vm1 = vcmask 1041408   ;;  %v2332_v17 = vmov 65535  }
   0xe   : > { %s2831_s24 = smov (!%p361_p4, %s2305_s24), 1  ;;  %v2395_v3 = vshrl.u32 %v2796_v0, 7  ;;  %2287 = vset.pattern.permute.xlu1 %v2797_v11  ;;  %2286 = vset.pattern.permute.xlu0 %v2797_v11  ;;  %s2320_s20 = smov 122   ;;  %v469_v18 = vsel %vm467_vm0, 4294967295, %v2332_v17  ;;  %vm455_vm2 = vcmask 1039360   ;;  %vm460_vm3 = vcmask 23552  }
   0xf   : > { %v412_v4 = vunpack.c.0.s8 %v411_v2  ;;  %s2240_s28 = smul.u32 10, %s2831_s24  ;;  %s2321_s21 = smov 110   ;;  %v2496_v20 = vsel %vm468_vm1, %v469_v18, 0  ;;  %vm727_vm4 = vcmask 1031168   ;;  %vm886_vm5 = vcmask 900096  }
  0x10   : > { %2800 = vst [vmem:[#allocation2_spill] sm:$0xff] %v2395_v3  ;;  %s2322_s22 = smov 119   ;;  %s2323_s23 = smov 109   ;;  %vm1045_vm6 = vcmask 891904   ;;  %vm1204_vm7 = vcmask 883712   ;;  %vm1363_vm8 = vcmask 752640  }
  0x11   : > { %v415_v5 = vsub.s32 %v412_v4, %v2395_v3  ;;  %s368_s8 = scalar_lea.vmem %s2788_s0, %s2240_s28  ;;  %s2238_s9 = sadd.s32 8, %s2240_s28  ;;  %vm1522_vm9 = vcmask 744448   ;;  %vm1681_vm10 = vcmask 736256   ;;  %vm1897_vm11 = vcmask 261120  }
  0x12   : > { %v406_v6 = vld [vmem:[%s368_s8] sm:$0xff]  ;;  %s383_s13 = scalar_lea.vmem %s2789_s1, %s2238_s9  ;;  %s2324_s28 = smov 116  }
  0x13   : > { %v2402_v7 = vrot.slane %v406_v6, %v415_v5  ;;  %v409_v8 = vcombine.high %v406_v6, %v406_v6  ;;  %v2423_v13 = vld [vmem:[%s383_s13] sm:$0x3]  ;;  %s2325_s29 = smov 108   ;;  %s2326_s30 = smov 113  }
  0x14   : > { %s2327_s8 = smov 92   ;;  %s2328_s9 = smov 91  }
  0x15   : > { %v2406_v9 = vcombine.high %v2402_v7, %v2402_v7  ;;  %v2408_v10 = vrot.slane %v409_v8, %v415_v5  ;;  %s2330_s11 = smov 90   ;;  %s2331_s12 = smov 104   ;;  %v596_v36 = vand.u32 %v2496_v20, %v2402_v7 }
  0x17   : > { %447 = vrot.lane.b32.xlu0 %v2406_v9, %s2317_s10  ;;  %v2415_v12 = vcombine.high %v2408_v10, %v2408_v10  ;;  %v599_v32 = vand.u32 %v2496_v20, %v2406_v9  ;;  %v602_v37 = vand.u32 %v2496_v20, %v2408_v10 }
  0x19   : > { %451 = vrot.lane.b32.xlu1 %v2415_v12, %s2317_s10  ;;  %v605_v29 = vand.u32 %v2496_v20, %v2415_v12 }
  0x1b   : > { %449 = vrot.lane.b32.xlu0 %v2408_v10, %s2317_s10 }
  0x1d   : > { %453 = vrot.lane.b32.xlu1 %v2423_v13, %s2317_s10 }
  0x1f   : > { %445 = vrot.lane.b32.xlu0 %v2402_v7, %s2317_s10  ;;  %s2329_s10 = smov 107  }
  0x21   : > { %440 = vrot.lane.b32.xlu1 %v2430_v14, %s2318_s18 }
  0x23   : > { %442 = vrot.lane.b32.xlu0 %v2436_v15, %s2318_s18 }
  0x25   : > { %719 = vrot.lane.b32.xlu1 %v2406_v9, %s2319_s19 }
  0x27   : > { %721 = vrot.lane.b32.xlu0 %v2408_v10, %s2319_s19 }
  0x29   : > { %723 = vrot.lane.b32.xlu1 %v2415_v12, %s2319_s19 }
  0x2b   : > { %725 = vrot.lane.b32.xlu0 %v2423_v13, %s2319_s19 }
  0x2d   : > { %717 = vrot.lane.b32.xlu1 %v2402_v7, %s2319_s19 }
  0x2f   : > { %713 = vrot.lane.b32.xlu0 %v2430_v14, %s2320_s20 }
  0x31   : > { %715 = vrot.lane.b32.xlu1 %v2436_v15, %s2320_s20 }
  0x33   : > { %878 = vrot.lane.b32.xlu0 %v2406_v9, %s2321_s21 }
  0x35   : > { %880 = vrot.lane.b32.xlu1 %v2408_v10, %s2321_s21 }
  0x37   : > { %882 = vrot.lane.b32.xlu0 %v2415_v12, %s2321_s21 }
  0x39   : > { %884 = vrot.lane.b32.xlu1 %v2423_v13, %s2321_s21 }
  0x3b   : > { %876 = vrot.lane.b32.xlu0 %v2402_v7, %s2321_s21 }
  0x3d   : > { %872 = vrot.lane.b32.xlu1 %v2430_v14, %s2322_s22 }
  0x3f   : > { %874 = vrot.lane.b32.xlu0 %v2436_v15, %s2322_s22 }
  0x41   : > { %1037 = vrot.lane.b32.xlu1 %v2406_v9, %s2323_s23 }
  0x43   : > { %1039 = vrot.lane.b32.xlu0 %v2408_v10, %s2323_s23 }
  0x45   : > { %1041 = vrot.lane.b32.xlu1 %v2415_v12, %s2323_s23 }
  0x47   : > { %1043 = vrot.lane.b32.xlu0 %v2423_v13, %s2323_s23 }
  0x49   : > { %1035 = vrot.lane.b32.xlu1 %v2402_v7, %s2323_s23 }
  0x4b   : > { %1031 = vrot.lane.b32.xlu0 %v2430_v14, %s2324_s28 }
  0x4d   : > { %1033 = vrot.lane.b32.xlu1 %v2436_v15, %s2324_s28 }
  0x4f   : > { %1196 = vrot.lane.b32.xlu0 %v2406_v9, %s2325_s29 }
  0x51   : > { %1198 = vrot.lane.b32.xlu1 %v2408_v10, %s2325_s29 }
  0x53   : > { %1200 = vrot.lane.b32.xlu0 %v2415_v12, %s2325_s29 }
  0x55   : > { %1202 = vrot.lane.b32.xlu1 %v2423_v13, %s2325_s29 }
  0x57   : > { %1194 = vrot.lane.b32.xlu0 %v2402_v7, %s2325_s29  ;;  %s2239_s29 = sshll.u32 %s2831_s24, 5 }
  0x59   : > { %1190 = vrot.lane.b32.xlu1 %v2430_v14, %s2326_s30 }
  0x5b   : > { %1192 = vrot.lane.b32.xlu0 %v2436_v15, %s2326_s30 }
  0x5d   : > { %1355 = vrot.lane.b32.xlu1 %v2406_v9, %s2327_s8 }
  0x5f   : > { %1357 = vrot.lane.b32.xlu0 %v2408_v10, %s2327_s8 }
  0x61   : > { %1359 = vrot.lane.b32.xlu1 %v2415_v12, %s2327_s8 }
  0x63   : > { %1361 = vrot.lane.b32.xlu0 %v2423_v13, %s2327_s8 }
  0x65   : > { %1353 = vrot.lane.b32.xlu1 %v2402_v7, %s2327_s8 }
  0x67   : > { %1349 = vrot.lane.b32.xlu0 %v2430_v14, %s2321_s21 }
  0x69   : > { %1351 = vrot.lane.b32.xlu1 %v2436_v15, %s2321_s21 }
  0x6b   : > { %1514 = vrot.lane.b32.xlu0 %v2406_v9, %s2328_s9 }
  0x6d   : > { %1516 = vrot.lane.b32.xlu1 %v2408_v10, %s2328_s9 }
  0x6f   : > { %1518 = vrot.lane.b32.xlu0 %v2415_v12, %s2328_s9 }
  0x71   : > { %1520 = vrot.lane.b32.xlu1 %v2423_v13, %s2328_s9 }
  0x73   : > { %1512 = vrot.lane.b32.xlu0 %v2402_v7, %s2328_s9  ;;  %s394_s9 = scalar_lea.vmem %s2794_s6, %s2239_s29 }
  0x75   : > { %1508 = vrot.lane.b32.xlu1 %v2430_v14, %s2329_s10 }
  0x77   : > { %1510 = vrot.lane.b32.xlu0 %v2436_v15, %s2329_s10  ;;  %s2194_s10 = sshll.u32 %s2831_s24, 2 }
  0x78   : > { %s403_s13 = scalar_lea.vmem %s2795_s7, %s2194_s10 }
  0x79   : > { %1673 = vrot.lane.b32.xlu1 %v2406_v9, %s2330_s11 }
  0x7b   : > { %1675 = vrot.lane.b32.xlu0 %v2408_v10, %s2330_s11 }
  0x7d   : > { %1677 = vrot.lane.b32.xlu1 %v2415_v12, %s2330_s11 }
  0x7f   : > { %1679 = vrot.lane.b32.xlu0 %v2423_v13, %s2330_s11 }
  0x81   : > { %1671 = vrot.lane.b32.xlu1 %v2402_v7, %s2330_s11 }
  0x83   : > { %1667 = vrot.lane.b32.xlu0 %v2430_v14, %s2331_s12 }
  0x85   : > { %1669 = vrot.lane.b32.xlu1 %v2436_v15, %s2331_s12 }
  0x89   : > { %v448_v16 = vpop.permute.xlu0 %447 }
  0x8b   : > { %v452_v19 = vpop.permute.xlu1 %451 }
  0x8d   : > { %v450_v21 = vpop.permute.xlu0 %449 }
  0x8e   : > { %v457_v22 = vsel %vm455_vm2, %v448_v16, %v450_v21  ;;  %v458_v23 = vsel %vm455_vm2, %v450_v21, %v452_v19 }
  0x8f   : > { %v454_v24 = vpop.permute.xlu1 %453  ;;  %v475_v25 = vand.u32 %v2496_v20, %v457_v22  ;;  %v478_v31 = vand.u32 %v2496_v20, %v458_v23 }
  0x90   : > { %v459_v26 = vsel %vm455_vm2, %v452_v19, %v454_v24 }
  0x91   : > { %497 = vmatprep.subr.bf16.mxu0 %v475_v25  ;;  %v446_v27 = vpop.permute.xlu0 %445  ;;  %v481_v28 = vand.u32 %v2496_v20, %v459_v26 }
  0x92   : > { %v456_v30 = vsel %vm455_vm2, %v446_v27, %v448_v16 }
  0x93   : > { %550 = vmatprep.subr.bf16.mxu1 %v481_v28  ;;  %v472_v33 = vand.u32 %v2496_v20, %v456_v30  ;;  %v441_v34 = vpop.permute.xlu1 %440 }
  0x94   : > { %551 = vmatpush1.bf16.msra.mxu1 %v478_v31 }
  0x95   : > { %498 = vmatpush1.bf16.msra.mxu0 %v472_v33  ;;  %v443_v35 = vpop.permute.xlu0 %442  ;;  %674 = vmatprep.subr.bf16.mxu1 %v605_v29 }
  0x96   : > { %621 = vmatprep.subr.bf16.mxu0 %v599_v32 }
  0x97   : > { %2199 = vmatmul.mubr.msk.bf16.vlgmr.msra.gmra.mxu1 %vm460_vm3, %v441_v34  ;;  %v720_v38 = vpop.permute.xlu1 %719 }
  0x98   : > { %2197 = vmatmul.mubr.msk.bf16.vlgmr.msra.gmra.mxu0 %vm460_vm3, %v441_v34  ;;  %578 = vmatprep.mubr.bf16.mxu1 %v2797_v11 }
  0x99   : > { %525 = vmatprep.mubr.bf16.mxu0 %v2797_v11  ;;  %v722_v39 = vpop.permute.xlu0 %721  ;;  %622 = vmatpush1.bf16.msra.mxu0 %v596_v36 }
  0x9a   : > { %v729_v40 = vsel %vm727_vm4, %v720_v38, %v722_v39  ;;  %675 = vmatpush1.bf16.msra.mxu1 %v602_v37 }
  0x9b   : > { %v742_v41 = vand.u32 %v729_v40, %v2496_v20  ;;  %v724_v42 = vpop.permute.xlu1 %723 }
  0x9c   : > { %v730_v47 = vsel %vm727_vm4, %v722_v39, %v724_v42 }
  0x9d   : > { %v726_v43 = vpop.permute.xlu0 %725  ;;  %764 = vmatprep.subr.bf16.mxu0 %v742_v41  ;;  %v745_v51 = vand.u32 %v730_v47, %v2496_v20 }
  0x9e   : > { %v731_v44 = vsel %vm727_vm4, %v724_v42, %v726_v43 }
  0x9f   : > { %2200 = vmatmul.mubr.msk.bf16.gmra.mxu1 %vm460_vm3, %v443_v35  ;;  %v748_v45 = vand.u32 %v731_v44, %v2496_v20  ;;  %v718_v46 = vpop.permute.xlu1 %717 }
  0xa0   : > { %2198 = vmatmul.mubr.msk.bf16.gmra.mxu0 %vm460_vm3, %v443_v35  ;;  %692 = vmatprep.mubr.bf16.mxu1 %v2797_v11  ;;  %v728_v49 = vsel %vm727_vm4, %v718_v46, %v720_v38 }
  0xa1   : > { %639 = vmatprep.mubr.bf16.mxu0 %v2797_v11  ;;  %v714_v48 = vpop.permute.xlu0 %713  ;;  %817 = vmatprep.subr.bf16.mxu1 %v748_v45  ;;  %v739_v52 = vand.u32 %v728_v49, %v2496_v20 }
  0xa3   : > { %v716_v50 = vpop.permute.xlu1 %715 }
  0xa5   : > { %v879_v53 = vpop.permute.xlu0 %878 }
  0xa7   : > { %2203 = vmatmul.mubr.msk.bf16.vlgmr.msra.gmra.mxu1 %vm460_vm3, %v2430_v14  ;;  %v881_v54 = vpop.permute.xlu1 %880 }
  0xa8   : > { %2201 = vmatmul.mubr.msk.bf16.vlgmr.msra.gmra.mxu0 %vm460_vm3, %v2430_v14  ;;  %818 = vmatpush1.bf16.msra.mxu1 %v745_v51  ;;  %v888_v55 = vsel %vm886_vm5, %v879_v53, %v881_v54  ;;  %v1828_v51 = vld [vmem:[%s2791_s3 + $0x10] sm:$0xff] }
  0xa9   : > { %765 = vmatpush1.bf16.msra.mxu0 %v739_v52  ;;  %702 = vmatprep.mubr.bf16.mxu1 %v2797_v11  ;;  %v883_v56 = vpop.permute.xlu0 %882  ;;  %v901_v57 = vand.u32 %v888_v55, %v2496_v20  ;;  %v1826_v52 = vld [vmem:[%s2791_s3] sm:$0xff] }
  0xaa   : > { %649 = vmatprep.mubr.bf16.mxu0 %v2797_v11  ;;  %v889_v63 = vsel %vm886_vm5, %v881_v54, %v883_v56  ;;  %1842 = vperm.xlu0 %2286, %v1828_v51  }
  0xab   : > { %v885_v58 = vpop.permute.xlu1 %884  ;;  %923 = vmatprep.subr.bf16.mxu0 %v901_v57  ;;  %v904_v5 = vand.u32 %v889_v63, %v2496_v20 }
  0xac   : > { %v890_v59 = vsel %vm886_vm5, %v883_v56, %v885_v58  ;;  %v1827_v56 = vld [vmem:[%s2791_s3 + $0x8] sm:$0xff] }
  0xad   : > { %v877_v60 = vpop.permute.xlu0 %876  ;;  %v907_v61 = vand.u32 %v890_v59, %v2496_v20 }
  0xae   : > { %v887_v2 = vsel %vm886_vm5, %v877_v60, %v879_v53  ;;  %1837 = vperm.xlu0 %2286, %v1827_v56  }
  0xaf   : > { %2204 = vmatmul.mubr.msk.bf16.gmra.mxu1 %vm460_vm3, %v2436_v15  ;;  %v873_v62 = vpop.permute.xlu1 %872  ;;  %976 = vmatprep.subr.bf16.mxu1 %v907_v61  ;;  %v898_v6 = vand.u32 %v887_v2, %v2496_v20 }
  0xb0   : > { %2202 = vmatmul.mubr.msk.bf16.gmra.mxu0 %vm460_vm3, %v2436_v15  ;;  %835 = vmatprep.mubr.bf16.mxu1 %v2797_v11 }
  0xb1   : > { %782 = vmatprep.mubr.bf16.mxu0 %v2797_v11  ;;  %v875_v1 = vpop.permute.xlu0 %874 }
  0xb3   : > { %v1038_v4 = vpop.permute.xlu1 %1037 }
  0xb5   : > { %v1040_v7 = vpop.permute.xlu0 %1039 }
  0xb6   : > { %v1047_v8 = vsel %vm1045_vm6, %v1038_v4, %v1040_v7 }
  0xb7   : > { %2207 = vmatmul.mubr.msk.bf16.vlgmr.msra.gmra.mxu1 %vm460_vm3, %v714_v48  ;;  %v1060_v9 = vand.u32 %v1047_v8, %v2496_v20  ;;  %v1042_v10 = vpop.permute.xlu1 %1041 }
  0xb8   : > { %2205 = vmatmul.mubr.msk.bf16.vlgmr.msra.gmra.mxu0 %vm460_vm3, %v714_v48  ;;  %977 = vmatpush1.bf16.msra.mxu1 %v904_v5  ;;  %v1048_v18 = vsel %vm1045_vm6, %v1040_v7, %v1042_v10  ;;  %v1829_v48 = vld [vmem:[%s2791_s3 + $0x18] sm:$0xff] }
  0xb9   : > { %924 = vmatpush1.bf16.msra.mxu0 %v898_v6  ;;  %845 = vmatprep.mubr.bf16.mxu1 %v2797_v11  ;;  %v1044_v12 = vpop.permute.xlu0 %1043  ;;  %v1063_v23 = vand.u32 %v1048_v18, %v2496_v20  ;;  %v1891_v6 = vld [vmem:[%s2793_s5] sm:$0xff] }
  0xba   : > { %792 = vmatprep.mubr.bf16.mxu0 %v2797_v11  ;;  %v1049_v13 = vsel %vm1045_vm6, %v1042_v10, %v1044_v12  ;;  %1082 = vmatprep.subr.bf16.mxu0 %v1060_v9 }
  0xbb   : > { %v1066_v14 = vand.u32 %v1049_v13, %v2496_v20  ;;  %v1036_v15 = vpop.permute.xlu1 %1035  ;;  %1847 = vperm.xlu1 %2287, %v1829_v48  }
  0xbc   : > { %v1046_v21 = vsel %vm1045_vm6, %v1036_v15, %v1038_v4 }
  0xbd   : > { %v1032_v16 = vpop.permute.xlu0 %1031  ;;  %1135 = vmatprep.subr.bf16.mxu1 %v1066_v14  ;;  %v1057_v25 = vand.u32 %v1046_v21, %v2496_v20 }
  0xbf   : > { %2208 = vmatmul.mubr.msk.bf16.gmra.mxu1 %vm460_vm3, %v716_v50  ;;  %v2555_v17 = vpop.permute.xlu1 %1033  ;;  %1832 = vperm.xlu1 %2287, %v1826_v52  }
  0xc0   : > { %2206 = vmatmul.mubr.msk.bf16.gmra.mxu0 %vm460_vm3, %v716_v50  ;;  %994 = vmatprep.mubr.bf16.mxu1 %v2797_v11 }
  0xc1   : > { %941 = vmatprep.mubr.bf16.mxu0 %v2797_v11  ;;  %v1197_v19 = vpop.permute.xlu0 %1196 }
  0xc3   : > { %v1199_v22 = vpop.permute.xlu1 %1198  ;;  %1894 = vperm.xlu1 %2287, %v1891_v6  }
  0xc4   : > { %v1206_v24 = vsel %vm1204_vm7, %v1197_v19, %v1199_v22 }
  0xc5   : > { %v1201_v26 = vpop.permute.xlu0 %1200  ;;  %v1219_v27 = vand.u32 %v1206_v24, %v2496_v20 }
  0xc6   : > { %v1207_v35 = vsel %vm1204_vm7, %v1199_v22, %v1201_v26 }
  0xc7   : > { %2211 = vmatmul.mubr.msk.bf16.vlgmr.msra.gmra.mxu1 %vm460_vm3, %v873_v62  ;;  %v1203_v28 = vpop.permute.xlu1 %1202  ;;  %v1222_v40 = vand.u32 %v1207_v35, %v2496_v20 }
  0xc8   : > { %2209 = vmatmul.mubr.msk.bf16.vlgmr.msra.gmra.mxu0 %vm460_vm3, %v873_v62  ;;  %1136 = vmatpush1.bf16.msra.mxu1 %v1063_v23  ;;  %v1208_v29 = vsel %vm1204_vm7, %v1201_v26, %v1203_v28 }
  0xc9   : > { %1083 = vmatpush1.bf16.msra.mxu0 %v1057_v25  ;;  %1004 = vmatprep.mubr.bf16.mxu1 %v2797_v11  ;;  %v1195_v30 = vpop.permute.xlu0 %1194  ;;  %v1225_v31 = vand.u32 %v1208_v29, %v2496_v20 }
  0xca   : > { %951 = vmatprep.mubr.bf16.mxu0 %v2797_v11  ;;  %1241 = vmatprep.subr.bf16.mxu0 %v1219_v27  ;;  %v1205_v37 = vsel %vm1204_vm7, %v1195_v30, %v1197_v19 }
  0xcb   : > { %v1191_v32 = vpop.permute.xlu1 %1190  ;;  %1294 = vmatprep.subr.bf16.mxu1 %v1225_v31  ;;  %v1216_v41 = vand.u32 %v1205_v37, %v2496_v20 }
  0xcd   : > { %v2572_v33 = vpop.permute.xlu0 %1192 }
  0xcf   : > { %2212 = vmatmul.mubr.msk.bf16.gmra.mxu1 %vm460_vm3, %v875_v1  ;;  %v1356_v34 = vpop.permute.xlu1 %1355 }
  0xd0   : > { %2210 = vmatmul.mubr.msk.bf16.gmra.mxu0 %vm460_vm3, %v875_v1  ;;  %1153 = vmatprep.mubr.bf16.mxu1 %v2797_v11 }
  0xd1   : > { %1100 = vmatprep.mubr.bf16.mxu0 %v2797_v11  ;;  %v1358_v36 = vpop.permute.xlu0 %1357 }
  0xd2   : > { %v1365_v38 = vsel %vm1363_vm8, %v1356_v34, %v1358_v36 }
  0xd3   : > { %v1360_v39 = vpop.permute.xlu1 %1359  ;;  %v1378_v43 = vand.u32 %v1365_v38, %v2496_v20 }
  0xd4   : > { %v1366_v54 = vsel %vm1363_vm8, %v1358_v36, %v1360_v39 }
  0xd5   : > { %v1362_v42 = vpop.permute.xlu0 %1361  ;;  %v1381_v60 = vand.u32 %v1366_v54, %v2496_v20 }
  0xd6   : > { %v1367_v44 = vsel %vm1363_vm8, %v1360_v39, %v1362_v42 }
  0xd7   : > { %2215 = vmatmul.mubr.msk.bf16.vlgmr.msra.gmra.mxu1 %vm460_vm3, %v1032_v16  ;;  %v1384_v45 = vand.u32 %v1367_v44, %v2496_v20  ;;  %v1354_v46 = vpop.permute.xlu1 %1353 }
  0xd8   : > { %2213 = vmatmul.mubr.msk.bf16.vlgmr.msra.gmra.mxu0 %vm460_vm3, %v1032_v16  ;;  %1295 = vmatpush1.bf16.msra.mxu1 %v1222_v40  ;;  %v1364_v57 = vsel %vm1363_vm8, %v1354_v46, %v1356_v34 }
  0xd9   : > { %1242 = vmatpush1.bf16.msra.mxu0 %v1216_v41  ;;  %1163 = vmatprep.mubr.bf16.mxu1 %v2797_v11  ;;  %v1350_v47 = vpop.permute.xlu0 %1349  ;;  %v1375_v62 = vand.u32 %v1364_v57, %v2496_v20 }
  0xda   : > { %1110 = vmatprep.mubr.bf16.mxu0 %v2797_v11  ;;  %1400 = vmatprep.subr.bf16.mxu0 %v1378_v43 }
  0xdb   : > { %1453 = vmatprep.subr.bf16.mxu1 %v1384_v45  ;;  %v2593_v49 = vpop.permute.xlu1 %1351 }
  0xdd   : > { %v1515_v50 = vpop.permute.xlu0 %1514 }
  0xdf   : > { %2216 = vmatmul.mubr.msk.bf16.gmra.mxu1 %vm460_vm3, %v2555_v17  ;;  %v1517_v53 = vpop.permute.xlu1 %1516 }
  0xe0   : > { %2214 = vmatmul.mubr.msk.bf16.gmra.mxu0 %vm460_vm3, %v2555_v17  ;;  %1312 = vmatprep.mubr.bf16.mxu1 %v2797_v11  ;;  %v1524_v58 = vsel %vm1522_vm9, %v1515_v50, %v1517_v53 }
  0xe1   : > { %1259 = vmatprep.mubr.bf16.mxu0 %v2797_v11  ;;  %v1519_v55 = vpop.permute.xlu0 %1518  ;;  %v1537_v1 = vand.u32 %v1524_v58, %v2496_v20 }
  0xe2   : > { %v1525_v9 = vsel %vm1522_vm9, %v1517_v53, %v1519_v55 }
  0xe3   : > { %v1521_v59 = vpop.permute.xlu1 %1520  ;;  %v1540_v15 = vand.u32 %v1525_v9, %v2496_v20 }
  0xe4   : > { %v1526_v61 = vsel %vm1522_vm9, %v1519_v55, %v1521_v59 }
  0xe5   : > { %v1513_v63 = vpop.permute.xlu0 %1512  ;;  %v1543_v2 = vand.u32 %v1526_v61, %v2496_v20 }
  0xe6   : > { %v1523_v12 = vsel %vm1522_vm9, %v1513_v63, %v1515_v50 }
  0xe7   : > { %2219 = vmatmul.mubr.msk.bf16.vlgmr.msra.gmra.mxu1 %vm460_vm3, %v1191_v32  ;;  %v1509_v4 = vpop.permute.xlu1 %1508  ;;  %v1534_v17 = vand.u32 %v1523_v12, %v2496_v20 }
  0xe8   : > { %2217 = vmatmul.mubr.msk.bf16.vlgmr.msra.gmra.mxu0 %vm460_vm3, %v1191_v32  ;;  %1454 = vmatpush1.bf16.msra.mxu1 %v1381_v60 }
  0xe9   : > { %1401 = vmatpush1.bf16.msra.mxu0 %v1375_v62  ;;  %1322 = vmatprep.mubr.bf16.mxu1 %v2797_v11  ;;  %v1511_v5 = vpop.permute.xlu0 %1510 }
  0xea   : > { %1269 = vmatprep.mubr.bf16.mxu0 %v2797_v11  ;;  %1559 = vmatprep.subr.bf16.mxu0 %v1537_v1 }
  0xeb   : > { %1612 = vmatprep.subr.bf16.mxu1 %v1543_v2  ;;  %v1674_v7 = vpop.permute.xlu1 %1673 }
  0xed   : > { %v1676_v8 = vpop.permute.xlu0 %1675 }
  0xee   : > { %v1683_v14 = vsel %vm1681_vm10, %v1674_v7, %v1676_v8 }
  0xef   : > { %2220 = vmatmul.mubr.msk.bf16.gmra.mxu1 %vm460_vm3, %v2572_v33  ;;  %v1678_v13 = vpop.permute.xlu1 %1677  ;;  %v1696_v18 = vand.u32 %v1683_v14, %v2496_v20 }
  0xf0   : > { %2218 = vmatmul.mubr.msk.bf16.gmra.mxu0 %vm460_vm3, %v2572_v33  ;;  %1471 = vmatprep.mubr.bf16.mxu1 %v2797_v11  ;;  %v1684_v22 = vsel %vm1681_vm10, %v1676_v8, %v1678_v13 }
  0xf1   : > { %1418 = vmatprep.mubr.bf16.mxu0 %v2797_v11  ;;  %v1680_v10 = vpop.permute.xlu0 %1679  ;;  %v1699_v24 = vand.u32 %v1684_v22, %v2496_v20 }
  0xf2   : > { %v1685_v16 = vsel %vm1681_vm10, %v1678_v13, %v1680_v10 }
  0xf3   : > { %v1702_v19 = vand.u32 %v1685_v16, %v2496_v20  ;;  %v1672_v21 = vpop.permute.xlu1 %1671 }
  0xf4   : > { %v1682_v23 = vsel %vm1681_vm10, %v1672_v21, %v1674_v7 }
  0xf5   : > { %v1693_v25 = vand.u32 %v1682_v23, %v2496_v20  ;;  %v1668_v26 = vpop.permute.xlu0 %1667 }
  0xf7   : > { %2223 = vmatmul.mubr.msk.bf16.vlgmr.msra.gmra.mxu1 %vm460_vm3, %v1350_v47  ;;  %v1670_v20 = vpop.permute.xlu1 %1669 }
  0xf8   : > { %2221 = vmatmul.mubr.msk.bf16.vlgmr.msra.gmra.mxu0 %vm460_vm3, %v1350_v47  ;;  %1613 = vmatpush1.bf16.msra.mxu1 %v1540_v15 }
  0xf9   : > { %1560 = vmatpush1.bf16.msra.mxu0 %v1534_v17  ;;  %1481 = vmatprep.mubr.bf16.mxu1 %v2797_v11 }
  0xfa   : > { %1428 = vmatprep.mubr.bf16.mxu0 %v2797_v11  ;;  %1718 = vmatprep.subr.bf16.mxu0 %v1696_v18 }
  0xfb   : > { %1771 = vmatprep.subr.bf16.mxu1 %v1702_v19 }
  0xff   : > { %2224 = vmatmul.mubr.msk.bf16.gmra.mxu1 %vm460_vm3, %v2593_v49 }
 0x100   : > { %2222 = vmatmul.mubr.msk.bf16.gmra.mxu0 %vm460_vm3, %v2593_v49  ;;  %1630 = vmatprep.mubr.bf16.mxu1 %v2797_v11 }
 0x101   : > { %1577 = vmatprep.mubr.bf16.mxu0 %v2797_v11 }
 0x107   : > { %2227 = vmatmul.mubr.msk.bf16.vlgmr.msra.gmra.mxu1 %vm460_vm3, %v1509_v4 }
 0x108   : > { %2225 = vmatmul.mubr.msk.bf16.vlgmr.msra.gmra.mxu0 %vm460_vm3, %v1509_v4  ;;  %1772 = vmatpush1.bf16.msra.mxu1 %v1699_v24 }
 0x109   : > { %1719 = vmatpush1.bf16.msra.mxu0 %v1693_v25  ;;  %1640 = vmatprep.mubr.bf16.mxu1 %v2797_v11 }
 0x10a   : > { %1587 = vmatprep.mubr.bf16.mxu0 %v2797_v11 }
 0x10f   : > { %2228 = vmatmul.mubr.msk.bf16.gmra.mxu1 %vm460_vm3, %v1511_v5 }
 0x110   : > { %2226 = vmatmul.mubr.msk.bf16.gmra.mxu0 %vm460_vm3, %v1511_v5  ;;  %1789 = vmatprep.mubr.bf16.mxu1 %v2797_v11 }
 0x111   : > { %1736 = vmatprep.mubr.bf16.mxu0 %v2797_v11 }
 0x117   : > { %2231 = vmatmul.mubr.msk.bf16.vlgmr.msra.gmra.mxu1 %vm460_vm3, %v1668_v26 }
 0x118   : > { %2229 = vmatmul.mubr.msk.bf16.vlgmr.msra.gmra.mxu0 %vm460_vm3, %v1668_v26  ;;  %1799 = vmatprep.mubr.bf16.mxu1 %v2797_v11 }
 0x119   : > { %1746 = vmatprep.mubr.bf16.mxu0 %v2797_v11 }
 0x11f   : > { %2232 = vmatmul.mubr.msk.bf16.gmra.mxu1 %vm460_vm3, %v1670_v20 }
 0x120   : > { %2230 = vmatmul.mubr.msk.bf16.gmra.mxu0 %vm460_vm3, %v1670_v20  ;;  %1974 = vmatprep.mubr.bf16.mxu1 %v2797_v11 }
 0x121   : > { %1933 = vmatprep.mubr.bf16.mxu0 %v2797_v11 }
 0x157   : > { %v570_v27 = vpop.f32.mrf.mxu1 }
 0x158   : > { %v517_v28 = vpop.f32.mrf.mxu0 }
 0x159   : > { %v572_v29 = vpop.f32.mrf.mxu1 }
 0x15a   : > { %v519_v30 = vpop.f32.mrf.mxu0 }
 0x15b   : > { %v574_v31 = vpop.f32.mrf.mxu1 }
 0x15c   : > { %v521_v32 = vpop.f32.mrf.mxu0 }
 0x15d   : > { %v576_v33 = vpop.f32.mrf.mxu1 }
 0x15e   : > { %v523_v34 = vpop.f32.mrf.mxu0 }
 0x15f   : > { %v580_v35 = vpop.f32.mrf.mxu1 }
 0x160   : > { %v527_v36 = vpop.f32.mrf.mxu0 }
 0x161   : > { %v582_v37 = vpop.f32.mrf.mxu1 }
 0x162   : > { %v529_v38 = vpop.f32.mrf.mxu0 }
 0x163   : > { %v584_v39 = vpop.f32.mrf.mxu1 }
 0x164   : > { %v531_v40 = vpop.f32.mrf.mxu0 }
 0x165   : > { %v586_v41 = vpop.f32.mrf.mxu1 }
 0x166   : > { %v533_v42 = vpop.f32.mrf.mxu0 }
 0x167   : > { %v694_v43 = vpop.f32.mrf.mxu1 }
 0x168   : > { %v695_v44 = vadd.f32 %v694_v43, %v570_v27  ;;  %v641_v45 = vpop.f32.mrf.mxu0 }
 0x169   : > { %v642_v46 = vadd.f32 %v641_v45, %v517_v28  ;;  %v696_v47 = vpop.f32.mrf.mxu1 }
 0x16a   : > { %v697_v48 = vadd.f32 %v696_v47, %v572_v29  ;;  %v643_v49 = vpop.f32.mrf.mxu0 }
 0x16b   : > { %v644_v50 = vadd.f32 %v643_v49, %v519_v30  ;;  %v698_v51 = vpop.f32.mrf.mxu1 }
 0x16c   : > { %v699_v52 = vadd.f32 %v698_v51, %v574_v31  ;;  %v645_v53 = vpop.f32.mrf.mxu0 }
 0x16d   : > { %v646_v54 = vadd.f32 %v645_v53, %v521_v32  ;;  %v700_v55 = vpop.f32.mrf.mxu1 }
 0x16e   : > { %v701_v56 = vadd.f32 %v700_v55, %v576_v33  ;;  %v647_v57 = vpop.f32.mrf.mxu0 }
 0x16f   : > { %v648_v58 = vadd.f32 %v647_v57, %v523_v34  ;;  %v704_v59 = vpop.f32.mrf.mxu1 }
 0x170   : > { %v705_v60 = vadd.f32 %v704_v59, %v580_v35  ;;  %v651_v61 = vpop.f32.mrf.mxu0 }
 0x171   : > { %v652_v62 = vadd.f32 %v651_v61, %v527_v36  ;;  %v706_v63 = vpop.f32.mrf.mxu1 }
 0x172   : > { %v707_v1 = vadd.f32 %v706_v63, %v582_v37  ;;  %v653_v2 = vpop.f32.mrf.mxu0 }
 0x173   : > { %v654_v4 = vadd.f32 %v653_v2, %v529_v38  ;;  %v708_v5 = vpop.f32.mrf.mxu1 }
 0x174   : > { %v709_v6 = vadd.f32 %v708_v5, %v584_v39  ;;  %v655_v7 = vpop.f32.mrf.mxu0 }
 0x175   : > { %v656_v8 = vadd.f32 %v655_v7, %v531_v40  ;;  %v710_v9 = vpop.f32.mrf.mxu1 }
 0x176   : > { %v711_v10 = vadd.f32 %v710_v9, %v586_v41  ;;  %v657_v12 = vpop.f32.mrf.mxu0 }
 0x177   : > { %v658_v13 = vadd.f32 %v657_v12, %v533_v42  ;;  %v837_v14 = vpop.f32.mrf.mxu1 }
 0x178   : > { %v858_v15 = vadd.f32 %v837_v14, %v695_v44  ;;  %v784_v16 = vpop.f32.mrf.mxu0 }
 0x179   : > { %v856_v17 = vadd.f32 %v784_v16, %v642_v46  ;;  %v839_v18 = vpop.f32.mrf.mxu1 }
 0x17a   : > { %v859_v19 = vadd.f32 %v839_v18, %v697_v48  ;;  %v786_v21 = vpop.f32.mrf.mxu0 }
 0x17b   : > { %v857_v22 = vadd.f32 %v786_v21, %v644_v50  ;;  %v841_v23 = vpop.f32.mrf.mxu1 }
 0x17c   : > { %v862_v24 = vadd.f32 %v841_v23, %v699_v52  ;;  %v788_v25 = vpop.f32.mrf.mxu0 }
 0x17d   : > { %v860_v26 = vadd.f32 %v788_v25, %v646_v54  ;;  %v843_v20 = vpop.f32.mrf.mxu1 }
 0x17e   : > { %v863_v27 = vadd.f32 %v843_v20, %v701_v56  ;;  %v790_v28 = vpop.f32.mrf.mxu0 }
 0x17f   : > { %v861_v29 = vadd.f32 %v790_v28, %v648_v58  ;;  %v847_v30 = vpop.f32.mrf.mxu1 }
 0x180   : > { %v866_v31 = vadd.f32 %v847_v30, %v705_v60  ;;  %v794_v32 = vpop.f32.mrf.mxu0 }
 0x181   : > { %v864_v33 = vadd.f32 %v794_v32, %v652_v62  ;;  %v849_v34 = vpop.f32.mrf.mxu1 }
 0x182   : > { %v867_v35 = vadd.f32 %v849_v34, %v707_v1  ;;  %v796_v36 = vpop.f32.mrf.mxu0 }
 0x183   : > { %v865_v37 = vadd.f32 %v796_v36, %v654_v4  ;;  %v851_v38 = vpop.f32.mrf.mxu1 }
 0x184   : > { %v870_v39 = vadd.f32 %v851_v38, %v709_v6  ;;  %v798_v40 = vpop.f32.mrf.mxu0 }
 0x185   : > { %v868_v41 = vadd.f32 %v798_v40, %v656_v8  ;;  %v853_v42 = vpop.f32.mrf.mxu1 }
 0x186   : > { %v871_v43 = vadd.f32 %v853_v42, %v711_v10  ;;  %v800_v44 = vpop.f32.mrf.mxu0 }
 0x187   : > { %v869_v45 = vadd.f32 %v800_v44, %v658_v13  ;;  %v996_v46 = vpop.f32.mrf.mxu1 }
 0x188   : > { %v1017_v47 = vadd.f32 %v996_v46, %v858_v15  ;;  %v943_v48 = vpop.f32.mrf.mxu0 }
 0x189   : > { %v1015_v49 = vadd.f32 %v943_v48, %v856_v17  ;;  %v998_v50 = vpop.f32.mrf.mxu1 }
 0x18a   : > { %v1018_v51 = vadd.f32 %v998_v50, %v859_v19  ;;  %v945_v52 = vpop.f32.mrf.mxu0 }
 0x18b   : > { %v1016_v53 = vadd.f32 %v945_v52, %v857_v22  ;;  %v1000_v54 = vpop.f32.mrf.mxu1 }
 0x18c   : > { %v1021_v55 = vadd.f32 %v1000_v54, %v862_v24  ;;  %v947_v56 = vpop.f32.mrf.mxu0 }
 0x18d   : > { %v1019_v57 = vadd.f32 %v947_v56, %v860_v26  ;;  %v1002_v58 = vpop.f32.mrf.mxu1 }
 0x18e   : > { %v1022_v59 = vadd.f32 %v1002_v58, %v863_v27  ;;  %v949_v60 = vpop.f32.mrf.mxu0 }
 0x18f   : > { %v1020_v61 = vadd.f32 %v949_v60, %v861_v29  ;;  %v1006_v62 = vpop.f32.mrf.mxu1 }
 0x190   : > { %v2669_v63 = vadd.f32 %v1006_v62, %v866_v31  ;;  %v953_v1 = vpop.f32.mrf.mxu0 }
 0x191   : > { %v2671_v2 = vadd.f32 %v953_v1, %v864_v33  ;;  %v1008_v4 = vpop.f32.mrf.mxu1 }
 0x192   : > { %v2673_v5 = vadd.f32 %v1008_v4, %v867_v35  ;;  %v955_v6 = vpop.f32.mrf.mxu0 }
 0x193   : > { %v2675_v7 = vadd.f32 %v955_v6, %v865_v37  ;;  %v1010_v8 = vpop.f32.mrf.mxu1 }
 0x194   : > { %v2677_v9 = vadd.f32 %v1010_v8, %v870_v39  ;;  %v957_v10 = vpop.f32.mrf.mxu0 }
 0x195   : > { %v2679_v12 = vadd.f32 %v957_v10, %v868_v41  ;;  %v1012_v13 = vpop.f32.mrf.mxu1 }
 0x196   : > { %v2681_v14 = vadd.f32 %v1012_v13, %v871_v43  ;;  %v959_v15 = vpop.f32.mrf.mxu0 }
 0x197   : > { %v2683_v16 = vadd.f32 %v959_v15, %v869_v45  ;;  %v1155_v17 = vpop.f32.mrf.mxu1 }
 0x198   : > { %v2685_v18 = vadd.f32 %v1155_v17, %v1017_v47  ;;  %v1102_v19 = vpop.f32.mrf.mxu0 }
 0x199   : > { %v2687_v21 = vadd.f32 %v1102_v19, %v1015_v49  ;;  %v1157_v22 = vpop.f32.mrf.mxu1 }
 0x19a   : > { %v2689_v23 = vadd.f32 %v1157_v22, %v1018_v51  ;;  %v1104_v24 = vpop.f32.mrf.mxu0 }
 0x19b   : > { %v2691_v25 = vadd.f32 %v1104_v24, %v1016_v53  ;;  %v1159_v26 = vpop.f32.mrf.mxu1 }
 0x19c   : > { %v2693_v20 = vadd.f32 %v1159_v26, %v1021_v55  ;;  %v1106_v27 = vpop.f32.mrf.mxu0 }
 0x19d   : > { %v2695_v28 = vadd.f32 %v1106_v27, %v1019_v57  ;;  %v1161_v29 = vpop.f32.mrf.mxu1 }
 0x19e   : > { %v2697_v30 = vadd.f32 %v1161_v29, %v1022_v59  ;;  %v1108_v31 = vpop.f32.mrf.mxu0 }
 0x19f   : > { %2801 = vst [vmem:[#allocation3_spill] sm:$0xff] %v2695_v28  ;;  %v2699_v32 = vadd.f32 %v1108_v31, %v1020_v61  ;;  %v1165_v33 = vpop.f32.mrf.mxu1 }
 0x1a0   : > { %2802 = vst [vmem:[#allocation4_spill] sm:$0xff] %v2697_v30  ;;  %v1112_v34 = vpop.f32.mrf.mxu0 }
 0x1a1   : > { %2803 = vst [vmem:[#allocation5_spill] sm:$0xff] %v2699_v32  ;;  %v1167_v35 = vpop.f32.mrf.mxu1 }
 0x1a2   : > { %v1114_v36 = vpop.f32.mrf.mxu0 }
 0x1a3   : > { %v1169_v37 = vpop.f32.mrf.mxu1 }
 0x1a4   : > { %v1116_v38 = vpop.f32.mrf.mxu0  ;;  %v1188_v30 = vadd.f32 %v1169_v37, %v2677_v9 }
 0x1a5   : > { %v1171_v39 = vpop.f32.mrf.mxu1 }
 0x1a6   : > { %v1118_v40 = vpop.f32.mrf.mxu0 }
 0x1a7   : > { %v1314_v41 = vpop.f32.mrf.mxu1 }
 0x1a8   : > { %v1261_v42 = vpop.f32.mrf.mxu0 }
 0x1a9   : > { %v1316_v43 = vpop.f32.mrf.mxu1 }
 0x1aa   : > { %v1263_v44 = vpop.f32.mrf.mxu0 }
 0x1ab   : > { %v1318_v45 = vpop.f32.mrf.mxu1 }
 0x1ac   : > { %v1265_v46 = vpop.f32.mrf.mxu0 }
 0x1ad   : > { %v1320_v47 = vpop.f32.mrf.mxu1 }
 0x1ae   : > { %v1267_v48 = vpop.f32.mrf.mxu0 }
 0x1af   : > { %v1324_v49 = vpop.f32.mrf.mxu1 }
 0x1b0   : > { %v1271_v50 = vpop.f32.mrf.mxu0 }
 0x1b1   : > { %v1326_v51 = vpop.f32.mrf.mxu1 }
 0x1b2   : > { %v1273_v52 = vpop.f32.mrf.mxu0 }
 0x1b3   : > { %v1328_v53 = vpop.f32.mrf.mxu1 }
 0x1b4   : > { %v1275_v54 = vpop.f32.mrf.mxu0 }
 0x1b5   : > { %v1330_v55 = vpop.f32.mrf.mxu1 }
 0x1b6   : > { %v1277_v56 = vpop.f32.mrf.mxu0 }
 0x1b7   : > { %v1473_v57 = vpop.f32.mrf.mxu1 }
 0x1b8   : > { %v1420_v58 = vpop.f32.mrf.mxu0 }
 0x1b9   : > { %v1475_v59 = vpop.f32.mrf.mxu1 }
 0x1ba   : > { %v1422_v60 = vpop.f32.mrf.mxu0 }
 0x1bb   : > { %v1477_v61 = vpop.f32.mrf.mxu1 }
 0x1bc   : > { %v1424_v62 = vpop.f32.mrf.mxu0 }
 0x1bd   : > { %v1479_v1 = vpop.f32.mrf.mxu1 }
 0x1be   : > { %v1426_v4 = vpop.f32.mrf.mxu0 }
 0x1bf   : > { %v1483_v6 = vpop.f32.mrf.mxu1 }
 0x1c0   : > { %v1430_v8 = vpop.f32.mrf.mxu0 }
 0x1c1   : > { %v1485_v10 = vpop.f32.mrf.mxu1 }
 0x1c2   : > { %v1432_v13 = vpop.f32.mrf.mxu0 }
 0x1c3   : > { %v2701_v15 = vpop.f32.mrf.mxu1 }
 0x1c4   : > { %2804 = vst [vmem:[#allocation6_spill] sm:$0xff] %v2701_v15  ;;  %v2703_v17 = vpop.f32.mrf.mxu0  ;;  %v1184_v15 = vadd.f32 %v1165_v33, %v2669_v63  ;;  %v1333_v63 = vadd.f32 %v1261_v42, %v2687_v21  ;;  %v1339_v33 = vadd.f32 %v1318_v45, %v2693_v20  ;;  %v2735_v21 = vpop.permute.xlu1 %1847 }
 0x1c5   : > { %2805 = vst [vmem:[#allocation7_spill] sm:$0xff] %v2703_v17  ;;  %v2705_v19 = vpop.f32.mrf.mxu1  ;;  %v1182_v17 = vadd.f32 %v1112_v34, %v2671_v2  ;;  %v1336_v2 = vadd.f32 %v1316_v43, %v2689_v23  ;;  %v2812_v34 = vld [vmem:[#allocation3_spill] sm:$0xff]  ;;  %v1347_v23 = vadd.f32 %v1328_v53, %v1188_v30 }
 0x1c6   : > { %2806 = vst [vmem:[#allocation8_spill] sm:$0xff] %v2705_v19  ;;  %v2707_v22 = vpop.f32.mrf.mxu0  ;;  %v1185_v19 = vadd.f32 %v1167_v35, %v2673_v5  ;;  %v1334_v5 = vadd.f32 %v1263_v44, %v2691_v25  ;;  %v1337_v9 = vadd.f32 %v1265_v46, %v2812_v34  ;;  %v2813_v35 = vld [vmem:[#allocation4_spill] sm:$0xff]  ;;  %v1492_v44 = vadd.f32 %v1420_v58, %v1333_v63 }
 0x1c7   : > { %2807 = vst [vmem:[#allocation9_spill] sm:$0xff] %v2707_v22  ;;  %v1632_v24 = vpop.f32.mrf.mxu1  ;;  %v1183_v22 = vadd.f32 %v1114_v36, %v2675_v7  ;;  %v2814_v36 = vld [vmem:[#allocation5_spill] sm:$0xff]  ;;  %v1495_v45 = vadd.f32 %v1475_v59, %v1336_v2 }
 0x1c8   : > { %v1579_v26 = vpop.f32.mrf.mxu0  ;;  %v1493_v46 = vadd.f32 %v1422_v60, %v1334_v5 }
 0x1c9   : > { %v1634_v27 = vpop.f32.mrf.mxu1 }
 0x1ca   : > { %v1581_v29 = vpop.f32.mrf.mxu0 }
 0x1cb   : > { %v2709_v31 = vpop.f32.mrf.mxu1  ;;  %v2815_v58 = vld [vmem:[#allocation6_spill] sm:$0xff] }
 0x1cc   : > { %2808 = vst [vmem:[#allocation10_spill] sm:$0xff] %v2709_v31  ;;  %v2711_v0 = vpop.f32.mrf.mxu0  ;;  %v1186_v31 = vadd.f32 %v1116_v38, %v2679_v12  ;;  %v1340_v12 = vadd.f32 %v1320_v47, %v2813_v35  ;;  %v1341_v38 = vadd.f32 %v1271_v50, %v1182_v17  ;;  %v1496_v50 = vadd.f32 %v1424_v62, %v1337_v9  ;;  %v2816_v60 = vld [vmem:[#allocation7_spill] sm:$0xff] }
 0x1cd   : > { %2809 = vst [vmem:[#allocation11_spill] sm:$0xff] %v2711_v0  ;;  %v2713_v11 = vpop.f32.mrf.mxu1  ;;  %v1189_v0 = vadd.f32 %v1171_v39, %v2681_v14  ;;  %v1338_v14 = vadd.f32 %v1267_v48, %v2814_v36  ;;  %v1344_v39 = vadd.f32 %v1326_v51, %v1185_v19  ;;  %v2739_v48 = vpop.permute.xlu0 %1842  ;;  %v1506_v59 = vadd.f32 %v2815_v58, %v1347_v23 }
 0x1ce   : > { %2810 = vst [vmem:[#allocation12_spill] sm:$0xff] %v2713_v11  ;;  %v2715_v3 = vpop.f32.mrf.mxu0  ;;  %v1187_v11 = vadd.f32 %v1118_v40, %v2683_v16  ;;  %v1343_v16 = vadd.f32 %v1324_v49, %v1184_v15  ;;  %v1498_v49 = vadd.f32 %v1477_v61, %v1339_v33  ;;  %v1499_v51 = vadd.f32 %v1479_v1, %v1340_v12  ;;  %v1833_v1 = vpop.permute.xlu1 %1832 }
 0x1cf   : > { %2811 = vst [vmem:[#allocation13_spill] sm:$0xff] %v2715_v3  ;;  %v2721_v32 = vpop.f32.mrf.mxu1  ;;  %v1335_v3 = vadd.f32 %v1314_v41, %v2685_v18  ;;  %v1342_v18 = vadd.f32 %v1273_v52, %v1183_v22  ;;  %v1345_v41 = vadd.f32 %v1275_v54, %v1186_v31  ;;  %v1348_v25 = vadd.f32 %v1330_v55, %v1189_v0 }
 0x1d0   : > { %v1589_v28 = vpop.f32.mrf.mxu0  ;;  %v1346_v20 = vadd.f32 %v1277_v56, %v1187_v11  ;;  %v1497_v17 = vadd.f32 %v1426_v4, %v1338_v14  ;;  %v1502_v30 = vadd.f32 %v1483_v6, %v1343_v16  ;;  %v1500_v53 = vadd.f32 %v1430_v8, %v1341_v38  ;;  %v2818_v4 = vld [vmem:[#allocation9_spill] sm:$0xff] }
 0x1d1   : > { %v1644_v7 = vpop.f32.mrf.mxu1  ;;  %v1494_v42 = vadd.f32 %v1473_v57, %v1335_v3  ;;  %v1651_v0 = vadd.f32 %v1579_v26, %v1492_v44  ;;  %v1503_v54 = vadd.f32 %v1485_v10, %v1344_v39  ;;  %v1501_v11 = vadd.f32 %v1432_v13, %v1342_v18 }
 0x1d2   : > { %v1591_v37 = vpop.f32.mrf.mxu0  ;;  %v1654_v55 = vadd.f32 %v1634_v27, %v1495_v45  ;;  %v1504_v19 = vadd.f32 %v2816_v60, %v1345_v41  ;;  %v1652_v61 = vadd.f32 %v1581_v29, %v1493_v46  ;;  %v1505_v6 = vadd.f32 %v2818_v4, %v1346_v20  ;;  %v1838_v29 = vpop.permute.xlu0 %1837 }
 0x1d3   : > { %v1646_v40 = vpop.f32.mrf.mxu1  ;;  %v1653_v52 = vadd.f32 %v1632_v24, %v1494_v42  ;;  %v2817_v24 = vld [vmem:[#allocation8_spill] sm:$0xff]  ;;  %v2819_v8 = vld [vmem:[#allocation10_spill] sm:$0xff]  ;;  %v1661_v12 = vadd.f32 %v2721_v32, %v1502_v30  ;;  %v1659_v36 = vadd.f32 %v1589_v28, %v1500_v53  ;;  %v1662_v39 = vadd.f32 %v1644_v7, %v1503_v54 }
 0x1d4   : > { %v1593_v43 = vpop.f32.mrf.mxu0  ;;  %v1507_v31 = vadd.f32 %v2817_v24, %v1348_v25  ;;  %v1657_v26 = vadd.f32 %v2819_v8, %v1498_v49  ;;  %v2820_v13 = vld [vmem:[#allocation11_spill] sm:$0xff]  ;;  %v1660_v18 = vadd.f32 %v1591_v37, %v1501_v11  ;;  %v1665_v42 = vadd.f32 %v1646_v40, %v1506_v59 }
 0x1d5   : > { %v2737_v47 = vpop.f32.mrf.mxu1  ;;  %v1655_v27 = vadd.f32 %v2820_v13, %v1496_v50  ;;  %v2821_v2 = vld [vmem:[#allocation12_spill] sm:$0xff]  ;;  %v1663_v49 = vadd.f32 %v1593_v43, %v1504_v19 }
 0x1d6   : > { %v2741_v15 = vpop.f32.mrf.mxu0  ;;  %v1658_v5 = vadd.f32 %v2821_v2, %v1499_v51  ;;  %v2822_v33 = vld [vmem:[#allocation13_spill] sm:$0xff] }
 0x1d7   : > { %v1791_v3 = vpop.f32.mrf.mxu1  ;;  %v1656_v34 = vadd.f32 %v2822_v33, %v1497_v17  ;;  %v1664_v8 = vadd.f32 %v2741_v15, %v1505_v6 }
 0x1d8   : > { %v1812_v56 = vadd.f32 %v1791_v3, %v1653_v52  ;;  %v1738_v57 = vpop.f32.mrf.mxu0 }
 0x1d9   : > { %v1810_v62 = vadd.f32 %v1738_v57, %v1651_v0  ;;  %v1793_v22 = vpop.f32.mrf.mxu1 }
 0x1da   : > { %v1813_v63 = vadd.f32 %v1793_v22, %v1654_v55  ;;  %v1740_v10 = vpop.f32.mrf.mxu0  ;;  %v1852_v14 = vadd.f32 %v1833_v1, %v1812_v56 }
 0x1db   : > { %v1811_v9 = vadd.f32 %v1740_v10, %v1652_v61  ;;  %v1795_v35 = vpop.f32.mrf.mxu1  ;;  %v1850_v23 = vadd.f32 %v1833_v1, %v1810_v62  ;;  %v1666_v62 = vadd.f32 %v2737_v47, %v1507_v31 }
 0x1dc   : > { %v1816_v16 = vadd.f32 %v1795_v35, %v1657_v26  ;;  %v1742_v38 = vpop.f32.mrf.mxu0  ;;  %v1853_v20 = vadd.f32 %v1833_v1, %v1813_v63  ;;  %v1868_v32 = vmax.f32 %v1852_v14, 0.0 }
 0x1dd   : > { %v1814_v41 = vadd.f32 %v1742_v38, %v1655_v27  ;;  %v1797_v25 = vpop.f32.mrf.mxu1  ;;  %v1851_v50 = vadd.f32 %v1833_v1, %v1811_v9  ;;  %v1866_v7 = vmax.f32 %v1850_v23, 0.0 }
 0x1de   : > { %v1856_v44 = vadd.f32 %v1838_v29, %v1816_v16  ;;  %v1817_v45 = vadd.f32 %v1797_v25, %v1658_v5  ;;  %v1744_v46 = vpop.f32.mrf.mxu0  ;;  %v1869_v40 = vmax.f32 %v1853_v20, 0.0 }
 0x1df   : > { %v1854_v51 = vadd.f32 %v1838_v29, %v1814_v41  ;;  %v1815_v52 = vadd.f32 %v1744_v46, %v1656_v34  ;;  %v1801_v17 = vpop.f32.mrf.mxu1  ;;  %v1867_v43 = vmax.f32 %v1851_v50, 0.0  ;;  %v2333_v41 = vmov 1966171168  }
 0x1e0   : > { %v1872_v28 = vmax.f32 %v1856_v44, 0.0  ;;  %v1857_v30 = vadd.f32 %v1838_v29, %v1817_v45  ;;  %v1820_v53 = vadd.f32 %v1801_v17, %v1661_v12  ;;  %v1748_v0 = vpop.f32.mrf.mxu0  ;;  %v2010_v25 = vunpack.c.l.s4 %v2333_v41 }
 0x1e1   : > { %v1870_v37 = vmax.f32 %v1854_v51, 0.0  ;;  %v1855_v3 = vadd.f32 %v1838_v29, %v1815_v52  ;;  %v1818_v54 = vadd.f32 %v1748_v0, %v1659_v36  ;;  %v1803_v11 = vpop.f32.mrf.mxu1 }
 0x1e2   : > { %v1885_v55 = vpack.c.bf16 %v1872_v28, %v1868_v32  ;;  %v1873_v56 = vmax.f32 %v1857_v30, 0.0  ;;  %v1821_v57 = vadd.f32 %v1803_v11, %v1662_v39  ;;  %v1750_v58 = vpop.f32.mrf.mxu0  ;;  %v1860_v1 = vadd.f32 %v2739_v48, %v1820_v53 }
 0x1e3   : > { %v1883_v59 = vpack.c.bf16 %v1870_v37, %v1866_v7  ;;  %v1871_v60 = vmax.f32 %v1855_v3, 0.0  ;;  %v1819_v19 = vadd.f32 %v1750_v58, %v1660_v18  ;;  %v1805_v61 = vpop.f32.mrf.mxu1  ;;  %v1858_v26 = vadd.f32 %v2739_v48, %v1818_v54  ;;  %v2823_v3 = vld [vmem:[#allocation2_spill] sm:$0xff] }
 0x1e4   : > { %v1824_v22 = vadd.f32 %v1805_v61, %v1665_v42  ;;  %v1752_v24 = vpop.f32.mrf.mxu0  ;;  %v1886_v4 = vpack.c.bf16 %v1873_v56, %v1869_v40  ;;  %v1861_v27 = vadd.f32 %v2739_v48, %v1821_v57  ;;  %v1876_v9 = vmax.f32 %v1860_v1, 0.0  ;;  %v1895_v42 = vpop.permute.xlu1 %1894 }
 0x1e5   : > { %v1822_v63 = vadd.f32 %v1752_v24, %v1663_v49  ;;  %v1807_v10 = vpop.f32.mrf.mxu1  ;;  %v1884_v13 = vpack.c.bf16 %v1871_v60, %v1867_v43  ;;  %v1859_v47 = vadd.f32 %v2739_v48, %v1819_v19  ;;  %v1874_v6 = vmax.f32 %v1858_v26, 0.0 }
 0x1e6   : > { %v1864_v2 = vadd.f32 %v2735_v21, %v1824_v22  ;;  %v1825_v5 = vadd.f32 %v1807_v10, %v1666_v62  ;;  %v1754_v33 = vpop.f32.mrf.mxu0  ;;  %v1877_v36 = vmax.f32 %v1861_v27, 0.0  ;;  %v2011_v52 = vunpack.c.0.s8 %v2010_v25 }
 0x1e7   : > { %v1862_v31 = vadd.f32 %v2735_v21, %v1822_v63  ;;  %v1823_v34 = vadd.f32 %v1754_v33, %v1664_v8  ;;  %v1875_v38 = vmax.f32 %v1859_v47, 0.0  ;;  %v2824_v40 = vmov 0  }
 0x1e8   : > { %v1880_v35 = vmax.f32 %v1864_v2, 0.0  ;;  %v1865_v15 = vadd.f32 %v2735_v21, %v1825_v5  ;;  %v2014_v54 = vsub.s32 %v2011_v52, %v2823_v3  ;;  %v2825_v62 = vlaneseq }
 0x1e9   : > { %v1878_v29 = vmax.f32 %v1862_v31, 0.0  ;;  %v1863_v12 = vadd.f32 %v2735_v21, %v1823_v34  ;;  %v1882_v21 = vld [vmem:[%s2792_s4] sm:$0xf] }
 0x1ea   : > { %v1889_v14 = vpack.c.bf16 %v1880_v35, %v1876_v9  ;;  %v1881_v16 = vmax.f32 %v1865_v15, 0.0  ;;  %vm2033_vm0 = vcmp.lt.s32.totalorder %v2825_v62, 512 }
 0x1eb   : > { %v1887_v39 = vpack.c.bf16 %v1878_v29, %v1874_v6  ;;  %v1879_v18 = vmax.f32 %v1863_v12, 0.0 }
 0x1ec   : > { %v1890_v23 = vpack.c.bf16 %v1881_v16, %v1877_v36 }
 0x1ed   : > { %v1888_v48 = vpack.c.bf16 %v1879_v18, %v1875_v38 }
 0x1ee   : > { %1954 = vmatprep.subr.bf16.mxu1 %v1890_v23 }
 0x1ef   : > { %1913 = vmatprep.subr.bf16.mxu0 %v1888_v48  ;;  %1955 = vmatpush1.bf16.msra.mxu1 %v1889_v14 }
 0x1f0   : > { %1914 = vmatpush1.bf16.msra.mxu0 %v1887_v39  ;;  %1956 = vmatprep.subr.bf16.mxu1 %v1886_v4 }
 0x1f1   : > { %1915 = vmatprep.subr.bf16.mxu0 %v1884_v13 }
 0x1f3   : > { %1957 = vmatpush1.bf16.msra.mxu1 %v1885_v55 }
 0x1f4   : > { %1916 = vmatpush1.bf16.msra.mxu0 %v1883_v59 }
 0x1f6   : > { %2234 = vmatmul.mubr.msk.bf16.vlgmr.msra.gmra.mxu1 %vm1897_vm11, %v1882_v21 }
 0x1f7   : > { %2233 = vmatmul.mubr.msk.bf16.vlgmr.msra.gmra.mxu0 %vm1897_vm11, %v1882_v21 }
 0x2b6   : > { %v1976_v20 = vpop.f32.mrf.mxu1 }
 0x2b7   : > { %v1977_v44 = vadd.f32 %v1976_v20, %v1895_v42  ;;  %v1935_v45 = vpop.f32.mrf.mxu0 }
 0x2b8   : > { %v1936_v46 = vadd.f32 %v1935_v45, %v1895_v42  ;;  %v1978_v49 = vpop.f32.mrf.mxu1 }
 0x2b9   : > { %1985 = vst [vmem:[%s394_s9 + $0x10] sm:$0xff] %v1977_v44  ;;  %v1993_v50 = vrot.slane %v1977_v44, 7  ;;  %v1979_v51 = vadd.f32 %v1978_v49, %v1895_v42  ;;  %v1937_v17 = vpop.f32.mrf.mxu0 }
 0x2ba   : > { %1983 = vst [vmem:[%s394_s9] sm:$0xff] %v1936_v46  ;;  %v1991_v32 = vrot.slane %v1936_v46, 7  ;;  %v1938_v28 = vadd.f32 %v1937_v17, %v1895_v42  ;;  %v1980_v30 = vpop.f32.mrf.mxu1 }
 0x2bb   : > { %vm2001_vm12 = vcmp.gt.f32.partialorder %v1977_v44, %v1993_v50  ;;  %1986 = vst [vmem:[%s394_s9 + $0x18] sm:$0xff] %v1979_v51  ;;  %v1994_v53 = vrot.slane %v1979_v51, 7  ;;  %v1939_v0 = vpop.f32.mrf.mxu0 }
 0x2bc   : > { %vm1999_vm13 = vcmp.gt.f32.partialorder %v1936_v46, %v1991_v32  ;;  %1984 = vst [vmem:[%s394_s9 + $0x8] sm:$0xff] %v1938_v28  ;;  %v1992_v7 = vrot.slane %v1938_v28, 7  ;;  %v1981_v37 = vpop.f32.mrf.mxu1  ;;  %v2005_v55 = vsel %vm2001_vm12, 1, %v2824_v40 }
 0x2bd   : > { %vm2002_vm14 = vcmp.gt.f32.partialorder %v1979_v51, %v1994_v53  ;;  %v1940_v11 = vpop.f32.mrf.mxu0  ;;  %v2003_v57 = vsel %vm1999_vm13, 1, %v2824_v40 }
 0x2be   : > { %v2006_v56 = vsel %vm2002_vm14, 1, %v2824_v40  ;;  %vm2000_vm15 = vcmp.gt.f32.partialorder %v1938_v28, %v1992_v7 }
 0x2bf   : > { %v2008_v58 = vcombine.low %v2005_v55, %v2006_v56  ;;  %v2004_v43 = vsel %vm2000_vm15, 1, %v2824_v40 }
 0x2c0   : > { %v2007_v59 = vcombine.low %v2003_v57, %v2004_v43 }
 0x2c1   : > { %v2022_v60 = vrot.slane %v2008_v58, %v2014_v54 }
 0x2c2   : > { %v2015_v19 = vrot.slane %v2007_v59, %v2014_v54 }
 0x2c4   : > { %v2023_v61 = vcombine.high %v2015_v19, %v2022_v60 }
 0x2c6   : > { %v2030_v1 = vrot.slane %v2023_v61, %v2014_v54 }
 0x2c8   : > { %2035 = vst.msk [vmem:[%s403_s13] sm:$0xf] %vm2033_vm0, %v2030_v1 }
 0x2c9 PF: > { %s18_s26 = sadd.s32 1, %s2313_s26   ;;  %s2826_s24 = smov %s2309_s25 }
 0x2ca   : > { %p15_p5 = scmp.ge.s32.totalorder %s18_s26, 4   ;;  %s2827_s25 = smov %s2829_s27 }
 0x2cc   :  { %17 = sbr.rel (!%p15_p5) target bundleno = 2 (0x2), region = 89 }

</bundles_post_ra>
